<compile_context>
chip_gen: v5e
topology: v5e:2x2
jax: 0.10.0
libtpu: 0.0.40
codegen_flags: <defaults>
</compile_context>

<pallas_src>
import numpy as np
import jax
import jax.numpy as jnp
from jax.experimental import pallas as pl
from jax.experimental.pallas import tpu as pltpu

EPS = 1e-5           # torch.nn.InstanceNorm1d default eps
LEAKY_SLOPE = 0.01   # torch leaky_relu default negative_slope
CP = 128             # lane-padded channel width
K0_PAD = 256         # sinc kernel taps 251 -> 256 (MXU-aligned contraction)


def _round_up(x, m):
    return ((x + m - 1) // m) * m


# ----------------------------------------------------------------------------
# ParamSincFB(80, 251, sr=16000, min_low_hz=50, min_band_hz=50) filter synthesis
# (plain numpy: parameter/setup glue, matches asteroid_filterbanks semantics)
# ----------------------------------------------------------------------------
def make_sinc_filters(n_filters=80, kernel_size=251, sample_rate=16000,
                      min_low_hz=50, min_band_hz=50):
    cutoff = n_filters // 2

    def to_mel(hz):
        return 2595.0 * np.log10(1.0 + hz / 700.0)

    def to_hz(mel):
        return 700.0 * (10.0 ** (mel / 2595.0) - 1.0)

    low_hz = 30.0
    high_hz = sample_rate / 2 - (min_low_hz + min_band_hz)
    mel = np.linspace(to_mel(low_hz), to_mel(high_hz), cutoff + 1)
    hz = to_hz(mel)
    low_hz_ = hz[:-1].reshape(-1, 1)         # learnable param init
    band_hz_ = np.diff(hz).reshape(-1, 1)    # learnable param init

    half_kernel = kernel_size // 2
    window_ = np.hamming(kernel_size)[:half_kernel]                               # (125,)
    n_ = 2.0 * np.pi * np.arange(-half_kernel, 0.0).reshape(1, -1) / sample_rate  # (1,125)

    low = min_low_hz + np.abs(low_hz_)                                            # (40,1)
    high = np.clip(low + min_band_hz + np.abs(band_hz_), min_low_hz, sample_rate / 2)
    band = (high - low)[:, 0]                                                     # (40,)

    ft_low = low @ n_
    ft_high = high @ n_

    # cos filters
    bp_left_c = ((np.sin(ft_high) - np.sin(ft_low)) / (n_ / 2.0)) * window_
    bp_center_c = 2.0 * band.reshape(-1, 1)
    bp_right_c = np.flip(bp_left_c, axis=1)
    cos_f = np.concatenate([bp_left_c, bp_center_c, bp_right_c], axis=1) / (2.0 * band[:, None])

    # sin filters
    bp_left_s = ((np.cos(ft_low) - np.cos(ft_high)) / (n_ / 2.0)) * window_
    bp_center_s = np.zeros((cutoff, 1))
    bp_right_s = -np.flip(bp_left_s, axis=1)
    sin_f = np.concatenate([bp_left_s, bp_center_s, bp_right_s], axis=1) / (2.0 * band[:, None])

    filters = np.concatenate([cos_f, sin_f], axis=0)   # (80, 251)
    return filters.astype(np.float32)


# ----------------------------------------------------------------------------
# Fused Pallas kernel
# grid = (B, NT0): B "parallel", stage-0 time-tiles "arbitrary".
# Every step: sinc-conv matmul -> abs -> maxpool(3,3) -> pooled bf16 rows + running
# sum/sumsq.  Last step: stage-0 InstanceNorm+lrelu in place, then stages 1 and 2
# (conv -> maxpool -> IN -> lrelu) out of VMEM scratch.
# ----------------------------------------------------------------------------
def make_sincnet_kernel(TP0, NT0, L_pool0, L1P, L_pool1, L2P, L_pool2, K1, K2):
    def kernel(p0_ref, w0_ref, w1_ref, w2_ref, vec_ref, o_ref,
               h0_ref, h1_ref, conv_ref, stat_ref):
        # p0_ref  : (1, 3*TP0, 256) bf16  residue-major im2col patch tile
        # w0_ref  : (256, 128)      bf16  sinc filterbank (taps x channels, padded)
        # w1_ref  : (5, 128, 128)   bf16  Conv1d(80,60,5)  (tap, c_in, c_out) padded
        # w2_ref  : (5, 128, 128)   bf16  Conv1d(60,60,5)  padded
        # vec_ref : (8, 128) f32  rows = [g0, b0, bias1, g1, b1, bias2, g2, b2]
        # o_ref   : (1, L_pool2, 128) f32
        # h0_ref  : (NT0*TP0+8, 128) bf16  pooled stage-0 activations (scratch)
        # h1_ref  : (~L_pool1+pad, 128) bf16  pooled stage-1 activations (scratch)
        # conv_ref: (L1P, 128) f32  conv accumulator reused by stages 1/2
        # stat_ref: (2, 128) f32   running [sum; sumsq] for the stage-0 InstanceNorm
        t = pl.program_id(1)

        @pl.when(t == 0)
        def _init():
            stat_ref[...] = jnp.zeros_like(stat_ref)

        # ---- stage 0 (every tile): one MXU matmul, fused abs + maxpool(3,3) ----
        # rows are residue-major: row r*TP0+p == conv time 3*(t*TP0+p)+r, so pooling
        # is a max over three contiguous TP0-row slices (plain vector loads).
        c = jnp.abs(jnp.dot(p0_ref[0], w0_ref[...],
                            preferred_element_type=jnp.float32))        # (3*TP0, 128)
        p = jnp.maximum(jnp.maximum(c[0:TP0], c[TP0:2 * TP0]), c[2 * TP0:3 * TP0])

        # running IN statistics; mask pooled rows >= L_pool0 (zero-padded tail)
        row0 = pl.multiple_of(t * TP0, 8)
        ridx = row0 + jax.lax.broadcasted_iota(jnp.int32, (TP0, CP), 0)
        pv = jnp.where(ridx < L_pool0, p, 0.0)
        stat_ref[0:1, :] += jnp.sum(pv, axis=0, keepdims=True)
        stat_ref[1:2, :] += jnp.sum(pv * pv, axis=0, keepdims=True)

        # store only pooled rows, bf16 (3x fewer rows, half the store traffic)
        h0_ref[pl.ds(row0, TP0), :] = p.astype(jnp.bfloat16)

        # ---- finalize on the last tile: stage-0 IN, then stages 1 and 2 ----
        @pl.when(t == NT0 - 1)
        def _finalize():
            inv_n0 = 1.0 / float(L_pool0)
            mean0 = stat_ref[0:1, :] * inv_n0
            var0 = stat_ref[1:2, :] * inv_n0 - mean0 * mean0
            scale0 = jax.lax.rsqrt(var0 + EPS) * vec_ref[0:1, :]
            shift0 = vec_ref[1:2, :] - mean0 * scale0

            # normalize + leaky_relu h0 in place, chunked to bound vreg pressure
            def norm_chunk(i, carry):
                r0 = pl.multiple_of(i * TP0, 8)
                v = h0_ref[pl.ds(r0, TP0), :].astype(jnp.float32) * scale0 + shift0
                v = jnp.where(v >= 0, v, LEAKY_SLOPE * v)
                h0_ref[pl.ds(r0, TP0), :] = v.astype(jnp.bfloat16)
                return carry
            jax.lax.fori_loop(0, NT0, norm_chunk, 0)

            # ---- stage 1: Conv1d(80,60,5) = 5 accumulated 128-deep dots ------
            # shifted windows read straight from the h0 scratch ref (no concat)
            conv_ref[...] = jnp.dot(h0_ref[0:L1P, :], w1_ref[0],
                                    preferred_element_type=jnp.float32)
            for k in range(1, K1):
                conv_ref[...] += jnp.dot(h0_ref[k:k + L1P, :], w1_ref[k],
                                         preferred_element_type=jnp.float32)

            # maxpool(3,3) then add bias (max(x)+b == max(x+b)), then IN + lrelu
            p1 = conv_ref[pl.ds(0, L_pool1, 3), :]
            p1 = jnp.maximum(p1, conv_ref[pl.ds(1, L_pool1, 3), :])
            p1 = jnp.maximum(p1, conv_ref[pl.ds(2, L_pool1, 3), :]) + vec_ref[2:3, :]
            mean1 = jnp.mean(p1, axis=0, keepdims=True)
            var1 = jnp.mean((p1 - mean1) ** 2, axis=0, keepdims=True)
            y1 = (p1 - mean1) * jax.lax.rsqrt(var1 + EPS) * vec_ref[3:4, :] + vec_ref[4:5, :]
            y1 = jnp.where(y1 >= 0, y1, LEAKY_SLOPE * y1)
            h1_ref[0:L_pool1, :] = y1.astype(jnp.bfloat16)

            # ---- stage 2: Conv1d(60,60,5), same structure --------------------
            conv_ref[0:L2P, :] = jnp.dot(h1_ref[0:L2P, :], w2_ref[0],
                                         preferred_element_type=jnp.float32)
            for k in range(1, K2):
                conv_ref[0:L2P, :] += jnp.dot(h1_ref[k:k + L2P, :], w2_ref[k],
                                              preferred_element_type=jnp.float32)

            p2 = conv_ref[pl.ds(0, L_pool2, 3), :]
            p2 = jnp.maximum(p2, conv_ref[pl.ds(1, L_pool2, 3), :])
            p2 = jnp.maximum(p2, conv_ref[pl.ds(2, L_pool2, 3), :]) + vec_ref[5:6, :]
            mean2 = jnp.mean(p2, axis=0, keepdims=True)
            var2 = jnp.mean((p2 - mean2) ** 2, axis=0, keepdims=True)
            y2 = (p2 - mean2) * jax.lax.rsqrt(var2 + EPS) * vec_ref[6:7, :] + vec_ref[7:8, :]
            o_ref[0] = jnp.where(y2 >= 0, y2, LEAKY_SLOPE * y2)

    return kernel


# ----------------------------------------------------------------------------
# Wrapper: wav-norm + streamed im2col layout prep (plain JAX) + fused pallas_call
# ----------------------------------------------------------------------------
def sincnet_forward(waveforms, params, pooled_tile=64):
    # waveforms: (B, 1, S) — PyTorch NCL convention
    B, _, S = waveforms.shape
    K0, _, C0 = params["w0"].shape          # 251, 1, 80
    K1, C1_in, C1 = params["w1"].shape      # 5, 80, 60
    K2, C2_in, C2 = params["w2"].shape      # 5, 60, 60

    L_conv0 = S - K0 + 1
    L_pool0 = L_conv0 // 3
    L_conv1 = L_pool0 - K1 + 1
    L_pool1 = L_conv1 // 3
    L_conv2 = L_pool1 - K2 + 1
    L_pool2 = L_conv2 // 3

    # stage-0 time tiling: TP0 pooled rows (== 3*TP0 conv rows) per grid step.
    # (raise pooled_tile to 256-512 for multi-second clips to amortize per-step cost)
    TP0 = max(8, (min(pooled_tile, _round_up(L_pool0, 8)) // 8) * 8)
    NT0 = -(-L_pool0 // TP0)
    L_rows = 3 * NT0 * TP0

    L1P = _round_up(L_conv1, 8)             # rounded-up stage-1 conv length
    L2P = _round_up(L_conv2, 8)             # rounded-up stage-2 conv length
    H0R = NT0 * TP0 + 8                     # h0 scratch rows (+ window slack)
    H1R = _round_up(L_pool1, 8) + 8         # h1 scratch rows (+ window slack)

    # ---- wav_norm1d: InstanceNorm1d(1, affine) over samples (cheap prep) ----
    x = waveforms[:, 0, :].astype(jnp.float32)
    mu = jnp.mean(x, axis=1, keepdims=True)
    var = jnp.mean((x - mu) ** 2, axis=1, keepdims=True)
    xn = (x - mu) * jax.lax.rsqrt(var + EPS) * params["wav_g"][0, 0] + params["wav_b"][0, 0]

    # ---- stage-0 im2col, built once in bf16 and streamed per time tile ------
    # TODO(synk): construct patch windows inside the kernel from the raw lane-dense
    # waveform to remove the remaining ~K0x HBM read amplification entirely.
    xb = xn[:, None, :].astype(jnp.bfloat16)
    patches = jax.lax.conv_general_dilated_patches(
        xb, filter_shape=(K0,), window_strides=(1,), padding="VALID",
        dimension_numbers=("NCH", "OIH", "NCH"))                  # (B, K0, L_conv0)
    patches = jnp.transpose(patches, (0, 2, 1))                   # (B, L_conv0, K0)
    patches = jnp.pad(patches, ((0, 0), (0, 0), (0, K0_PAD - K0)))
    if L_rows >= L_conv0:
        patches = jnp.pad(patches, ((0, 0), (0, L_rows - L_conv0), (0, 0)))
    else:
        patches = patches[:, :L_rows, :]
    # residue-major row order inside each tile so stage-0 maxpool(3,3) becomes a max
    # of three contiguous TP0-row slices instead of stride-3 sublane reads.
    patches = patches.reshape(B, NT0, TP0, 3, K0_PAD).transpose(0, 1, 3, 2, 4)
    patches = patches.reshape(B, NT0 * 3 * TP0, K0_PAD)

    # ---- pack / zero-pad parameters to lane width 128 ----
    w0p = jnp.pad(params["w0"][:, 0, :],
                  ((0, K0_PAD - K0), (0, CP - C0))).astype(jnp.bfloat16)       # (256,128)
    w1p = jnp.pad(params["w1"], ((0, 0), (0, CP - C1_in), (0, CP - C1))
                  ).astype(jnp.bfloat16)                                       # (5,128,128)
    w2p = jnp.pad(params["w2"], ((0, 0), (0, CP - C2_in), (0, CP - C2))
                  ).astype(jnp.bfloat16)                                       # (5,128,128)

    def padc(v, c):
        # NOTE: zero padding of gamma/beta/bias keeps padded channels exactly 0
        # through every InstanceNorm (0 * rsqrt(eps) * 0 + 0).
        return jnp.pad(v.astype(jnp.float32), ((0, 0), (0, CP - c)))

    vecs = jnp.concatenate([
        padc(params["g0"], C0), padc(params["b0"], C0),
        padc(params["bias1"], C1), padc(params["g1"], C1), padc(params["b1"], C1),
        padc(params["bias2"], C2), padc(params["g2"], C2), padc(params["b2"], C2),
    ], axis=0)                                                                 # (8, 128)

    kernel = make_sincnet_kernel(TP0, NT0, L_pool0, L1P, L_pool1, L2P, L_pool2, K1, K2)

    # explicit scoped-VMEM budget (v7x: 64 MiB total / 32 MiB default scoped)
    est = (2 * 3 * TP0 * K0_PAD * 2            # double-buffered patch tile (bf16)
           + 2 * K0_PAD * CP * 2               # w0
           + 2 * 2 * K1 * CP * CP * 2          # w1, w2
           + 2 * 8 * CP * 4                    # packed vectors
           + 2 * max(8, L_pool2) * CP * 4      # output block
           + H0R * CP * 2 + H1R * CP * 2 + L1P * CP * 4 + 8 * CP * 4)  # scratch
    vmem_limit = int(min(48 * 1024 * 1024, max(32 * 1024 * 1024, 2 * est)))

    out_p = pl.pallas_call(
        kernel,
        out_shape=jax.ShapeDtypeStruct((B, L_pool2, CP), jnp.float32),
        grid=(B, NT0),
        in_specs=[
            pl.BlockSpec((1, 3 * TP0, K0_PAD), lambda b, t: (b, t, 0)),   # patch tile
            pl.BlockSpec((K0_PAD, CP), lambda b, t: (0, 0)),              # w0
            pl.BlockSpec((K1, CP, CP), lambda b, t: (0, 0, 0)),           # w1
            pl.BlockSpec((K2, CP, CP), lambda b, t: (0, 0, 0)),           # w2
            pl.BlockSpec((8, CP), lambda b, t: (0, 0)),                   # packed vecs
        ],
        out_specs=pl.BlockSpec((1, L_pool2, CP), lambda b, t: (b, 0, 0)),
        scratch_shapes=[
            pltpu.VMEM((H0R, CP), jnp.bfloat16),   # pooled stage-0 activations
            pltpu.VMEM((H1R, CP), jnp.bfloat16),   # pooled stage-1 activations
            pltpu.VMEM((L1P, CP), jnp.float32),    # conv accumulator (stages 1/2)
            pltpu.VMEM((2, CP), jnp.float32),      # running sum / sumsq (stage-0 IN)
        ],
        compiler_params=pltpu.CompilerParams(
            dimension_semantics=("parallel", "arbitrary"),
            vmem_limit_bytes=vmem_limit),
    )(patches, w0p, w1p, w2p, vecs)

    # drop channel padding, return PyTorch NCL convention (B, 60, L_out)
    return jnp.transpose(out_p[:, :, :C2], (0, 2, 1))


# ----------------------------------------------------------------------------
# Pure-JAX reference (for correctness check only)
# ----------------------------------------------------------------------------
def reference_forward(waveforms, params):
    def inorm(x, g, b):  # x: (B, C, L)
        mu = x.mean(axis=2, keepdims=True)
        var = ((x - mu) ** 2).mean(axis=2, keepdims=True)
        return (x - mu) / jnp.sqrt(var + EPS) * g[None, :, None] + b[None, :, None]

    def conv1d(x, w):  # x: (B, C_in, L), w: (C_out, C_in, K)
        return jax.lax.conv_general_dilated(
            x, w, window_strides=(1,), padding="VALID",
            dimension_numbers=("NCH", "OIH", "NCH"),
            precision=jax.lax.Precision.HIGHEST)

    def maxpool3(x):
        B_, C_, L_ = x.shape
        Lp = L_ // 3
        return x[:, :, :Lp * 3].reshape(B_, C_, Lp, 3).max(axis=-1)

    x = inorm(waveforms.astype(jnp.float32),
              params["wav_g"].reshape(1), params["wav_b"].reshape(1))

    h = jnp.abs(conv1d(x, jnp.transpose(params["w0"], (2, 1, 0))))
    h = jax.nn.leaky_relu(inorm(maxpool3(h), params["g0"].reshape(-1),
                                params["b0"].reshape(-1)), LEAKY_SLOPE)

    h = conv1d(h, jnp.transpose(params["w1"], (2, 1, 0))) + params["bias1"].reshape(1, -1, 1)
    h = jax.nn.leaky_relu(inorm(maxpool3(h), params["g1"].reshape(-1),
                                params["b1"].reshape(-1)), LEAKY_SLOPE)

    h = conv1d(h, jnp.transpose(params["w2"], (2, 1, 0))) + params["bias2"].reshape(1, -1, 1)
    h = jax.nn.leaky_relu(inorm(maxpool3(h), params["g2"].reshape(-1),
                                params["b2"].reshape(-1)), LEAKY_SLOPE)
    return h


# ----------------------------------------------------------------------------
# Deterministic parameter init (shapes as in SincNet.__init__)
# ----------------------------------------------------------------------------
def init_params(key):
    filters = make_sinc_filters(80, 251, 16000, 50, 50)   # (80, 251)
    k = jax.random.split(key, 12)
    return {
        # stage 0: Encoder(ParamSincFB(80, 251)) — no bias
        "w0": jnp.asarray(filters.T[:, None, :]),                       # (251, 1, 80)
        "wav_g": 1.0 + 0.1 * jax.random.normal(k[0], (1, 1), jnp.float32),
        "wav_b": 0.1 * jax.random.normal(k[1], (1, 1), jnp.float32),
        "g0": 1.0 + 0.1 * jax.random.normal(k[2], (1, 80), jnp.float32),
        "b0": 0.1 * jax.random.normal(k[3], (1, 80), jnp.float32),
        # stage 1: Conv1d(80, 60, 5)
        "w1": jax.random.normal(k[4], (5, 80, 60), jnp.float32) / np.sqrt(80 * 5),
        "bias1": 0.1 * jax.random.normal(k[5], (1, 60), jnp.float32),
        "g1": 1.0 + 0.1 * jax.random.normal(k[6], (1, 60), jnp.float32),
        "b1": 0.1 * jax.random.normal(k[7], (1, 60), jnp.float32),
        # stage 2: Conv1d(60, 60, 5)
        "w2": jax.random.normal(k[8], (5, 60, 60), jnp.float32) / np.sqrt(60 * 5),
        "bias2": 0.1 * jax.random.normal(k[9], (1, 60), jnp.float32),
        "g2": 1.0 + 0.1 * jax.random.normal(k[10], (1, 60), jnp.float32),
        "b2": 0.1 * jax.random.normal(k[11], (1, 60), jnp.float32),
    }


if __name__ == "__main__":
    key = jax.random.PRNGKey(0)
    k_wave, k_params = jax.random.split(key)

    B, S = 2, 601                                   # small but >= sinc kernel (251)
    waveforms = jax.random.normal(k_wave, (B, 1, S), dtype=jnp.float32)
    params = init_params(k_params)

    out = jax.jit(sincnet_forward)(waveforms, params)
    out = jax.block_until_ready(out)

    # expected lengths: (601-250)=351 -> pool 117 -> 113 -> pool 37 -> 33 -> pool 11
    assert out.shape == (B, 60, 11), out.shape

    ref = reference_forward(waveforms, params)
    ref = jax.block_until_ready(ref)
    max_err = float(jnp.max(jnp.abs(out - ref)))
    # bf16 matmul inputs / bf16 activation scratch (f32 accumulation & IN stats)
    if not np.allclose(np.asarray(out), np.asarray(ref), atol=3e-2, rtol=3e-2):
        raise AssertionError(f"Pallas output mismatch vs reference, max abs err={max_err}")

    print("KERNEL_OK")
</pallas_src>

<mosaic_0001>
module attributes {stable_mosaic.version = 11 : i64} {
  func.func @kernel(%arg0: i32, %arg1: i32, %arg2: memref<1x192x256xbf16, #tpu.memory_space<vmem>>, %arg3: memref<256x128xbf16, #tpu.memory_space<vmem>>, %arg4: memref<5x128x128xbf16, #tpu.memory_space<vmem>>, %arg5: memref<5x128x128xbf16, #tpu.memory_space<vmem>>, %arg6: memref<8x128xf32, #tpu.memory_space<vmem>>, %arg7: memref<1x11x128xf32, #tpu.memory_space<vmem>>, %arg8: memref<136x128xbf16, #tpu.memory_space<vmem>>, %arg9: memref<48x128xbf16, #tpu.memory_space<vmem>>, %arg10: memref<120x128xf32, #tpu.memory_space<vmem>>, %arg11: memref<2x128xf32, #tpu.memory_space<vmem>>) attributes {dimension_semantics = [#tpu.dimension_semantics<parallel>, #tpu.dimension_semantics<arbitrary>], iteration_bounds = array<i64: 2, 2>, scalar_prefetch = 0 : i64, scratch_operands = 4 : i64, tpu.core_type = #tpu.core_type<tc>, window_params = [{transform_indices = @transform_0, window_bounds = array<i64: 1, 192, 256>}, {pipeline_mode = #tpu.pipeline_mode<synchronous>, transform_indices = @transform_1, window_bounds = array<i64: 256, 128>}, {pipeline_mode = #tpu.pipeline_mode<synchronous>, transform_indices = @transform_2, window_bounds = array<i64: 5, 128, 128>}, {pipeline_mode = #tpu.pipeline_mode<synchronous>, transform_indices = @transform_3, window_bounds = array<i64: 5, 128, 128>}, {pipeline_mode = #tpu.pipeline_mode<synchronous>, transform_indices = @transform_4, window_bounds = array<i64: 8, 128>}, {transform_indices = @transform_5, window_bounds = array<i64: 1, 11, 128>}]} {
    %c0_i32 = arith.constant 0 : i32
    %0 = arith.cmpi eq, %arg1, %c0_i32 : i32
    %1 = arith.extui %0 : i1 to i32
    %c0_i32_0 = arith.constant 0 : i32
    %2 = arith.cmpi ne, %1, %c0_i32_0 : i32
    scf.if %2 {
      %cst_17 = arith.constant 0.000000e+00 : f32
      %39 = vector.broadcast %cst_17 : f32 to vector<2x128xf32>
      %c0_18 = arith.constant 0 : index
      %c0_19 = arith.constant 0 : index
      %40 = vector.load %arg11[%c0_18, %c0_19] : memref<2x128xf32, #tpu.memory_space<vmem>>, vector<2x128xf32>
      tpu.vector_store %arg11[%c0_18, %c0_19], %39 {strides = array<i32>} : memref<2x128xf32, #tpu.memory_space<vmem>>, vector<2x128xf32>,
    } else {
    }
    %c0 = arith.constant 0 : index
    %c0_1 = arith.constant 0 : index
    %c0_2 = arith.constant 0 : index
    %3 = vector.load %arg2[%c0, %c0_1, %c0_2] : memref<1x192x256xbf16, #tpu.memory_space<vmem>>, vector<1x192x256xbf16>
    %4 = vector.shape_cast %3 : vector<1x192x256xbf16> to vector<192x256xbf16>
    %c0_3 = arith.constant 0 : index
    %c0_4 = arith.constant 0 : index
    %5 = vector.load %arg3[%c0_3, %c0_4] : memref<256x128xbf16, #tpu.memory_space<vmem>>, vector<256x128xbf16>
    %cst = arith.constant dense<0.000000e+00> : vector<192x128xf32>
    %6 = tpu.matmul %4, %5, %cst {dimension_numbers = #tpu.dot_dimension_numbers<[1], [0], [0], [1], [0, 0, 1, 1], [], []>} : vector<192x256xbf16>, vector<256x128xbf16>, vector<192x128xf32> -> vector<192x128xf32>
    %7 = math.absf %6 : vector<192x128xf32>
    %8 = vector.extract_strided_slice %7 {offsets = [0, 0], sizes = [64, 128], strides = [1, 1]} : vector<192x128xf32> to vector<64x128xf32>
    %9 = vector.extract_strided_slice %7 {offsets = [64, 0], sizes = [64, 128], strides = [1, 1]} : vector<192x128xf32> to vector<64x128xf32>
    %10 = arith.maximumf %8, %9 : vector<64x128xf32>
    %11 = vector.extract_strided_slice %7 {offsets = [128, 0], sizes = [64, 128], strides = [1, 1]} : vector<192x128xf32> to vector<64x128xf32>
    %12 = arith.maximumf %10, %11 : vector<64x128xf32>
    %c64_i32 = arith.constant 64 : i32
    %13 = arith.muli %arg1, %c64_i32 : i32
    %14 = tpu.assume_multiple %13, 8 : i32
    %15 = tpu.iota {dimensions = array<i32: 0>} : vector<64x128xi32>
    %16 = vector.broadcast %14 : i32 to vector<64x128xi32>
    %17 = arith.addi %16, %15 : vector<64x128xi32>
    %c117_i32 = arith.constant 117 : i32
    %18 = vector.broadcast %c117_i32 : i32 to vector<64x128xi32>
    %19 = arith.cmpi slt, %17, %18 : vector<64x128xi32>
    %cst_5 = arith.constant 0.000000e+00 : f32
    %20 = vector.broadcast %cst_5 : f32 to vector<64x128xf32>
    %21 = arith.select %19, %12, %20 : vector<64x128xi1>, vector<64x128xf32>
    %c0_6 = arith.constant 0 : index
    %c0_7 = arith.constant 0 : index
    %22 = vector.load %arg11[%c0_6, %c0_7] : memref<2x128xf32, #tpu.memory_space<vmem>>, vector<1x128xf32>
    %cst_8 = arith.constant dense<0.000000e+00> : vector<128xf32>
    %23 = vector.multi_reduction <add>, %21, %cst_8 [0] : vector<64x128xf32> to vector<128xf32>
    %24 = vector.shape_cast %23 : vector<128xf32> to vector<1x128xf32>
    %25 = arith.addf %22, %24 : vector<1x128xf32>
    %c0_9 = arith.constant 0 : index
    %c0_10 = arith.constant 0 : index
    %26 = vector.load %arg11[%c0_9, %c0_10] : memref<2x128xf32, #tpu.memory_space<vmem>>, vector<1x128xf32>
    tpu.vector_store %arg11[%c0_9, %c0_10], %25 {strides = array<i32>} : memref<2x128xf32, #tpu.memory_space<vmem>>, vector<1x128xf32>,
    %c1 = arith.constant 1 : index
    %c0_11 = arith.constant 0 : index
    %27 = vector.load %arg11[%c1, %c0_11] : memref<2x128xf32, #tpu.memory_space<vmem>>, vector<1x128xf32>
    %28 = arith.mulf %21, %21 : vector<64x128xf32>
    %cst_12 = arith.constant dense<0.000000e+00> : vector<128xf32>
    %29 = vector.multi_reduction <add>, %28, %cst_12 [0] : vector<64x128xf32> to vector<128xf32>
    %30 = vector.shape_cast %29 : vector<128xf32> to vector<1x128xf32>
    %31 = arith.addf %27, %30 : vector<1x128xf32>
    %c1_13 = arith.constant 1 : index
    %c0_14 = arith.constant 0 : index
    %32 = vector.load %arg11[%c1_13, %c0_14] : memref<2x128xf32, #tpu.memory_space<vmem>>, vector<1x128xf32>
    tpu.vector_store %arg11[%c1_13, %c0_14], %31 {strides = array<i32>} : memref<2x128xf32, #tpu.memory_space<vmem>>, vector<1x128xf32>,
    %33 = arith.truncf %12 : vector<64x128xf32> to vector<64x128xbf16>
    %34 = arith.index_cast %14 : i32 to index
    %c0_15 = arith.constant 0 : index
    %35 = vector.load %arg8[%34, %c0_15] : memref<136x128xbf16, #tpu.memory_space<vmem>>, vector<64x128xbf16>
    tpu.vector_store %arg8[%34, %c0_15], %33 {strides = array<i32>} : memref<136x128xbf16, #tpu.memory_space<vmem>>, vector<64x128xbf16>,
    %c1_i32 = arith.constant 1 : i32
    %36 = arith.cmpi eq, %arg1, %c1_i32 : i32
    %37 = arith.extui %36 : i1 to i32
    %c0_i32_16 = arith.constant 0 : i32
    %38 = arith.cmpi ne, %37, %c0_i32_16 : i32
    scf.if %38 {
      %c0_17 = arith.constant 0 : index
      %c0_18 = arith.constant 0 : index
      %39 = vector.load %arg11[%c0_17, %c0_18] : memref<2x128xf32, #tpu.memory_space<vmem>>, vector<1x128xf32>
      %cst_19 = arith.constant 0.00854700897 : f32
      %40 = vector.broadcast %cst_19 : f32 to vector<1x128xf32>
      %41 = arith.mulf %39, %40 : vector<1x128xf32>
      %c1_20 = arith.constant 1 : index
      %c0_21 = arith.constant 0 : index
      %42 = vector.load %arg11[%c1_20, %c0_21] : memref<2x128xf32, #tpu.memory_space<vmem>>, vector<1x128xf32>
      %cst_22 = arith.constant 0.00854700897 : f32
      %43 = vector.broadcast %cst_22 : f32 to vector<1x128xf32>
      %44 = arith.mulf %42, %43 : vector<1x128xf32>
      %45 = arith.mulf %41, %41 : vector<1x128xf32>
      %46 = arith.subf %44, %45 : vector<1x128xf32>
      %cst_23 = arith.constant 9.99999974E-6 : f32
      %47 = vector.broadcast %cst_23 : f32 to vector<1x128xf32>
      %48 = arith.addf %46, %47 : vector<1x128xf32>
      %49 = math.rsqrt %48 : vector<1x128xf32>
      %c0_24 = arith.constant 0 : index
      %c0_25 = arith.constant 0 : index
      %50 = vector.load %arg6[%c0_24, %c0_25] : memref<8x128xf32, #tpu.memory_space<vmem>>, vector<1x128xf32>
      %51 = arith.mulf %49, %50 : vector<1x128xf32>
      %c1_26 = arith.constant 1 : index
      %c0_27 = arith.constant 0 : index
      %52 = vector.load %arg6[%c1_26, %c0_27] : memref<8x128xf32, #tpu.memory_space<vmem>>, vector<1x128xf32>
      %53 = arith.mulf %41, %51 : vector<1x128xf32>
      %54 = arith.subf %52, %53 : vector<1x128xf32>
      %c0_i32_28 = arith.constant 0 : i32
      %c2_i32 = arith.constant 2 : i32
      %55 = arith.addi %c0_i32_28, %c2_i32 : i32
      %c1_i32_29 = arith.constant 1 : i32
      scf.for %arg12 = %c0_i32_28 to %55 step %c1_i32_29  : i32 {
        %c64_i32_164 = arith.constant 64 : i32
        %201 = arith.muli %arg12, %c64_i32_164 : i32
        %202 = tpu.assume_multiple %201, 8 : i32
        %203 = arith.index_cast %202 : i32 to index
        %c0_165 = arith.constant 0 : index
        %204 = vector.load %arg8[%203, %c0_165] : memref<136x128xbf16, #tpu.memory_space<vmem>>, vector<64x128xbf16>
        %205 = arith.extf %204 : vector<64x128xbf16> to vector<64x128xf32>
        %206 = vector.broadcast %51 : vector<1x128xf32> to vector<64x128xf32>
        %207 = arith.mulf %205, %206 : vector<64x128xf32>
        %208 = vector.broadcast %54 : vector<1x128xf32> to vector<64x128xf32>
        %209 = arith.addf %207, %208 : vector<64x128xf32>
        %cst_166 = arith.constant 0.000000e+00 : f32
        %210 = vector.broadcast %cst_166 : f32 to vector<64x128xf32>
        %211 = arith.cmpf oge, %209, %210 : vector<64x128xf32>
        %cst_167 = arith.constant 0.00999999977 : f32
        %212 = vector.broadcast %cst_167 : f32 to vector<64x128xf32>
        %213 = arith.mulf %212, %209 : vector<64x128xf32>
        %214 = arith.select %211, %209, %213 : vector<64x128xi1>, vector<64x128xf32>
        %215 = arith.truncf %214 : vector<64x128xf32> to vector<64x128xbf16>
        %216 = arith.index_cast %202 : i32 to index
        %c0_168 = arith.constant 0 : index
        %217 = vector.load %arg8[%216, %c0_168] : memref<136x128xbf16, #tpu.memory_space<vmem>>, vector<64x128xbf16>
        tpu.vector_store %arg8[%216, %c0_168], %215 {strides = array<i32>} : memref<136x128xbf16, #tpu.memory_space<vmem>>, vector<64x128xbf16>,
      }
      %c2_i32_30 = arith.constant 2 : i32
      %c0_31 = arith.constant 0 : index
      %c0_32 = arith.constant 0 : index
      %56 = vector.load %arg8[%c0_31, %c0_32] : memref<136x128xbf16, #tpu.memory_space<vmem>>, vector<120x128xbf16>
      %c0_33 = arith.constant 0 : index
      %c0_34 = arith.constant 0 : index
      %c0_35 = arith.constant 0 : index
      %57 = vector.load %arg4[%c0_33, %c0_34, %c0_35] : memref<5x128x128xbf16, #tpu.memory_space<vmem>>, vector<1x128x128xbf16>
      %58 = vector.shape_cast %57 : vector<1x128x128xbf16> to vector<128x128xbf16>
      %cst_36 = arith.constant dense<0.000000e+00> : vector<120x128xf32>
      %59 = tpu.matmul %56, %58, %cst_36 {dimension_numbers = #tpu.dot_dimension_numbers<[1], [0], [0], [1], [0, 0, 1, 1], [], []>} : vector<120x128xbf16>, vector<128x128xbf16>, vector<120x128xf32> -> vector<120x128xf32>
      %c0_37 = arith.constant 0 : index
      %c0_38 = arith.constant 0 : index
      %60 = vector.load %arg10[%c0_37, %c0_38] : memref<120x128xf32, #tpu.memory_space<vmem>>, vector<120x128xf32>
      tpu.vector_store %arg10[%c0_37, %c0_38], %59 {strides = array<i32>} : memref<120x128xf32, #tpu.memory_space<vmem>>, vector<120x128xf32>,
      %c0_39 = arith.constant 0 : index
      %c0_40 = arith.constant 0 : index
      %61 = vector.load %arg10[%c0_39, %c0_40] : memref<120x128xf32, #tpu.memory_space<vmem>>, vector<120x128xf32>
      %c1_41 = arith.constant 1 : index
      %c0_42 = arith.constant 0 : index
      %62 = vector.load %arg8[%c1_41, %c0_42] : memref<136x128xbf16, #tpu.memory_space<vmem>>, vector<120x128xbf16>
      %c1_43 = arith.constant 1 : index
      %c0_44 = arith.constant 0 : index
      %c0_45 = arith.constant 0 : index
      %63 = vector.load %arg4[%c1_43, %c0_44, %c0_45] : memref<5x128x128xbf16, #tpu.memory_space<vmem>>, vector<1x128x128xbf16>
      %64 = vector.shape_cast %63 : vector<1x128x128xbf16> to vector<128x128xbf16>
      %cst_46 = arith.constant dense<0.000000e+00> : vector<120x128xf32>
      %65 = tpu.matmul %62, %64, %cst_46 {dimension_numbers = #tpu.dot_dimension_numbers<[1], [0], [0], [1], [0, 0, 1, 1], [], []>} : vector<120x128xbf16>, vector<128x128xbf16>, vector<120x128xf32> -> vector<120x128xf32>
      %66 = arith.addf %61, %65 : vector<120x128xf32>
      %c0_47 = arith.constant 0 : index
      %c0_48 = arith.constant 0 : index
      %67 = vector.load %arg10[%c0_47, %c0_48] : memref<120x128xf32, #tpu.memory_space<vmem>>, vector<120x128xf32>
      tpu.vector_store %arg10[%c0_47, %c0_48], %66 {strides = array<i32>} : memref<120x128xf32, #tpu.memory_space<vmem>>, vector<120x128xf32>,
      %c0_49 = arith.constant 0 : index
      %c0_50 = arith.constant 0 : index
      %68 = vector.load %arg10[%c0_49, %c0_50] : memref<120x128xf32, #tpu.memory_space<vmem>>, vector<120x128xf32>
      %c2 = arith.constant 2 : index
      %c0_51 = arith.constant 0 : index
      %69 = vector.load %arg8[%c2, %c0_51] : memref<136x128xbf16, #tpu.memory_space<vmem>>, vector<120x128xbf16>
      %c2_52 = arith.constant 2 : index
      %c0_53 = arith.constant 0 : index
      %c0_54 = arith.constant 0 : index
      %70 = vector.load %arg4[%c2_52, %c0_53, %c0_54] : memref<5x128x128xbf16, #tpu.memory_space<vmem>>, vector<1x128x128xbf16>
      %71 = vector.shape_cast %70 : vector<1x128x128xbf16> to vector<128x128xbf16>
      %cst_55 = arith.constant dense<0.000000e+00> : vector<120x128xf32>
      %72 = tpu.matmul %69, %71, %cst_55 {dimension_numbers = #tpu.dot_dimension_numbers<[1], [0], [0], [1], [0, 0, 1, 1], [], []>} : vector<120x128xbf16>, vector<128x128xbf16>, vector<120x128xf32> -> vector<120x128xf32>
      %73 = arith.addf %68, %72 : vector<120x128xf32>
      %c0_56 = arith.constant 0 : index
      %c0_57 = arith.constant 0 : index
      %74 = vector.load %arg10[%c0_56, %c0_57] : memref<120x128xf32, #tpu.memory_space<vmem>>, vector<120x128xf32>
      tpu.vector_store %arg10[%c0_56, %c0_57], %73 {strides = array<i32>} : memref<120x128xf32, #tpu.memory_space<vmem>>, vector<120x128xf32>,
      %c0_58 = arith.constant 0 : index
      %c0_59 = arith.constant 0 : index
      %75 = vector.load %arg10[%c0_58, %c0_59] : memref<120x128xf32, #tpu.memory_space<vmem>>, vector<120x128xf32>
      %c3 = arith.constant 3 : index
      %c0_60 = arith.constant 0 : index
      %76 = vector.load %arg8[%c3, %c0_60] : memref<136x128xbf16, #tpu.memory_space<vmem>>, vector<120x128xbf16>
      %c3_61 = arith.constant 3 : index
      %c0_62 = arith.constant 0 : index
      %c0_63 = arith.constant 0 : index
      %77 = vector.load %arg4[%c3_61, %c0_62, %c0_63] : memref<5x128x128xbf16, #tpu.memory_space<vmem>>, vector<1x128x128xbf16>
      %78 = vector.shape_cast %77 : vector<1x128x128xbf16> to vector<128x128xbf16>
      %cst_64 = arith.constant dense<0.000000e+00> : vector<120x128xf32>
      %79 = tpu.matmul %76, %78, %cst_64 {dimension_numbers = #tpu.dot_dimension_numbers<[1], [0], [0], [1], [0, 0, 1, 1], [], []>} : vector<120x128xbf16>, vector<128x128xbf16>, vector<120x128xf32> -> vector<120x128xf32>
      %80 = arith.addf %75, %79 : vector<120x128xf32>
      %c0_65 = arith.constant 0 : index
      %c0_66 = arith.constant 0 : index
      %81 = vector.load %arg10[%c0_65, %c0_66] : memref<120x128xf32, #tpu.memory_space<vmem>>, vector<120x128xf32>
      tpu.vector_store %arg10[%c0_65, %c0_66], %80 {strides = array<i32>} : memref<120x128xf32, #tpu.memory_space<vmem>>, vector<120x128xf32>,
      %c0_67 = arith.constant 0 : index
      %c0_68 = arith.constant 0 : index
      %82 = vector.load %arg10[%c0_67, %c0_68] : memref<120x128xf32, #tpu.memory_space<vmem>>, vector<120x128xf32>
      %c4 = arith.constant 4 : index
      %c0_69 = arith.constant 0 : index
      %83 = vector.load %arg8[%c4, %c0_69] : memref<136x128xbf16, #tpu.memory_space<vmem>>, vector<120x128xbf16>
      %c4_70 = arith.constant 4 : index
      %c0_71 = arith.constant 0 : index
      %c0_72 = arith.constant 0 : index
      %84 = vector.load %arg4[%c4_70, %c0_71, %c0_72] : memref<5x128x128xbf16, #tpu.memory_space<vmem>>, vector<1x128x128xbf16>
      %85 = vector.shape_cast %84 : vector<1x128x128xbf16> to vector<128x128xbf16>
      %cst_73 = arith.constant dense<0.000000e+00> : vector<120x128xf32>
      %86 = tpu.matmul %83, %85, %cst_73 {dimension_numbers = #tpu.dot_dimension_numbers<[1], [0], [0], [1], [0, 0, 1, 1], [], []>} : vector<120x128xbf16>, vector<128x128xbf16>, vector<120x128xf32> -> vector<120x128xf32>
      %87 = arith.addf %82, %86 : vector<120x128xf32>
      %c0_74 = arith.constant 0 : index
      %c0_75 = arith.constant 0 : index
      %88 = vector.load %arg10[%c0_74, %c0_75] : memref<120x128xf32, #tpu.memory_space<vmem>>, vector<120x128xf32>
      tpu.vector_store %arg10[%c0_74, %c0_75], %87 {strides = array<i32>} : memref<120x128xf32, #tpu.memory_space<vmem>>, vector<120x128xf32>,
      %c0_76 = arith.constant 0 : index
      %c0_77 = arith.constant 0 : index
      %89 = tpu.strided_load %arg10[%c0_76, %c0_77] {strides = array<i32: 3, 1>} : memref<120x128xf32, #tpu.memory_space<vmem>>, vector<37x128xf32>
      %c1_78 = arith.constant 1 : index
      %c0_79 = arith.constant 0 : index
      %90 = tpu.strided_load %arg10[%c1_78, %c0_79] {strides = array<i32: 3, 1>} : memref<120x128xf32, #tpu.memory_space<vmem>>, vector<37x128xf32>
      %91 = arith.maximumf %89, %90 : vector<37x128xf32>
      %c2_80 = arith.constant 2 : index
      %c0_81 = arith.constant 0 : index
      %92 = tpu.strided_load %arg10[%c2_80, %c0_81] {strides = array<i32: 3, 1>} : memref<120x128xf32, #tpu.memory_space<vmem>>, vector<37x128xf32>
      %93 = arith.maximumf %91, %92 : vector<37x128xf32>
      %c2_82 = arith.constant 2 : index
      %c0_83 = arith.constant 0 : index
      %94 = vector.load %arg6[%c2_82, %c0_83] : memref<8x128xf32, #tpu.memory_space<vmem>>, vector<1x128xf32>
      %95 = vector.broadcast %94 : vector<1x128xf32> to vector<37x128xf32>
      %96 = arith.addf %93, %95 : vector<37x128xf32>
      %cst_84 = arith.constant dense<0.000000e+00> : vector<128xf32>
      %97 = vector.multi_reduction <add>, %96, %cst_84 [0] : vector<37x128xf32> to vector<128xf32>
      %98 = vector.shape_cast %97 : vector<128xf32> to vector<1x128xf32>
      %cst_85 = arith.constant 3.700000e+01 : f32
      %99 = vector.broadcast %cst_85 : f32 to vector<1x128xf32>
      %100 = arith.divf %98, %99 : vector<1x128xf32>
      %101 = vector.broadcast %100 : vector<1x128xf32> to vector<37x128xf32>
      %102 = arith.subf %96, %101 : vector<37x128xf32>
      %103 = arith.mulf %102, %102 : vector<37x128xf32>
      %cst_86 = arith.constant dense<0.000000e+00> : vector<128xf32>
      %104 = vector.multi_reduction <add>, %103, %cst_86 [0] : vector<37x128xf32> to vector<128xf32>
      %105 = vector.shape_cast %104 : vector<128xf32> to vector<1x128xf32>
      %cst_87 = arith.constant 3.700000e+01 : f32
      %106 = vector.broadcast %cst_87 : f32 to vector<1x128xf32>
      %107 = arith.divf %105, %106 : vector<1x128xf32>
      %108 = vector.broadcast %100 : vector<1x128xf32> to vector<37x128xf32>
      %109 = arith.subf %96, %108 : vector<37x128xf32>
      %cst_88 = arith.constant 9.99999974E-6 : f32
      %110 = vector.broadcast %cst_88 : f32 to vector<1x128xf32>
      %111 = arith.addf %107, %110 : vector<1x128xf32>
      %112 = math.rsqrt %111 : vector<1x128xf32>
      %113 = vector.broadcast %112 : vector<1x128xf32> to vector<37x128xf32>
      %114 = arith.mulf %109, %113 : vector<37x128xf32>
      %c3_89 = arith.constant 3 : index
      %c0_90 = arith.constant 0 : index
      %115 = vector.load %arg6[%c3_89, %c0_90] : memref<8x128xf32, #tpu.memory_space<vmem>>, vector<1x128xf32>
      %116 = vector.broadcast %115 : vector<1x128xf32> to vector<37x128xf32>
      %117 = arith.mulf %114, %116 : vector<37x128xf32>
      %c4_91 = arith.constant 4 : index
      %c0_92 = arith.constant 0 : index
      %118 = vector.load %arg6[%c4_91, %c0_92] : memref<8x128xf32, #tpu.memory_space<vmem>>, vector<1x128xf32>
      %119 = vector.broadcast %118 : vector<1x128xf32> to vector<37x128xf32>
      %120 = arith.addf %117, %119 : vector<37x128xf32>
      %cst_93 = arith.constant 0.000000e+00 : f32
      %121 = vector.broadcast %cst_93 : f32 to vector<37x128xf32>
      %122 = arith.cmpf oge, %120, %121 : vector<37x128xf32>
      %cst_94 = arith.constant 0.00999999977 : f32
      %123 = vector.broadcast %cst_94 : f32 to vector<37x128xf32>
      %124 = arith.mulf %123, %120 : vector<37x128xf32>
      %125 = arith.select %122, %120, %124 : vector<37x128xi1>, vector<37x128xf32>
      %126 = arith.truncf %125 : vector<37x128xf32> to vector<37x128xbf16>
      %c0_95 = arith.constant 0 : index
      %c0_96 = arith.constant 0 : index
      %127 = vector.load %arg9[%c0_95, %c0_96] : memref<48x128xbf16, #tpu.memory_space<vmem>>, vector<37x128xbf16>
      tpu.vector_store %arg9[%c0_95, %c0_96], %126 {strides = array<i32>} : memref<48x128xbf16, #tpu.memory_space<vmem>>, vector<37x128xbf16>,
      %c0_97 = arith.constant 0 : index
      %c0_98 = arith.constant 0 : index
      %128 = vector.load %arg9[%c0_97, %c0_98] : memref<48x128xbf16, #tpu.memory_space<vmem>>, vector<40x128xbf16>
      %c0_99 = arith.constant 0 : index
      %c0_100 = arith.constant 0 : index
      %c0_101 = arith.constant 0 : index
      %129 = vector.load %arg5[%c0_99, %c0_100, %c0_101] : memref<5x128x128xbf16, #tpu.memory_space<vmem>>, vector<1x128x128xbf16>
      %130 = vector.shape_cast %129 : vector<1x128x128xbf16> to vector<128x128xbf16>
      %cst_102 = arith.constant dense<0.000000e+00> : vector<40x128xf32>
      %131 = tpu.matmul %128, %130, %cst_102 {dimension_numbers = #tpu.dot_dimension_numbers<[1], [0], [0], [1], [0, 0, 1, 1], [], []>} : vector<40x128xbf16>, vector<128x128xbf16>, vector<40x128xf32> -> vector<40x128xf32>
      %c0_103 = arith.constant 0 : index
      %c0_104 = arith.constant 0 : index
      %132 = vector.load %arg10[%c0_103, %c0_104] : memref<120x128xf32, #tpu.memory_space<vmem>>, vector<40x128xf32>
      tpu.vector_store %arg10[%c0_103, %c0_104], %131 {strides = array<i32>} : memref<120x128xf32, #tpu.memory_space<vmem>>, vector<40x128xf32>,
      %c0_105 = arith.constant 0 : index
      %c0_106 = arith.constant 0 : index
      %133 = vector.load %arg10[%c0_105, %c0_106] : memref<120x128xf32, #tpu.memory_space<vmem>>, vector<40x128xf32>
      %c1_107 = arith.constant 1 : index
      %c0_108 = arith.constant 0 : index
      %134 = vector.load %arg9[%c1_107, %c0_108] : memref<48x128xbf16, #tpu.memory_space<vmem>>, vector<40x128xbf16>
      %c1_109 = arith.constant 1 : index
      %c0_110 = arith.constant 0 : index
      %c0_111 = arith.constant 0 : index
      %135 = vector.load %arg5[%c1_109, %c0_110, %c0_111] : memref<5x128x128xbf16, #tpu.memory_space<vmem>>, vector<1x128x128xbf16>
      %136 = vector.shape_cast %135 : vector<1x128x128xbf16> to vector<128x128xbf16>
      %cst_112 = arith.constant dense<0.000000e+00> : vector<40x128xf32>
      %137 = tpu.matmul %134, %136, %cst_112 {dimension_numbers = #tpu.dot_dimension_numbers<[1], [0], [0], [1], [0, 0, 1, 1], [], []>} : vector<40x128xbf16>, vector<128x128xbf16>, vector<40x128xf32> -> vector<40x128xf32>
      %138 = arith.addf %133, %137 : vector<40x128xf32>
      %c0_113 = arith.constant 0 : index
      %c0_114 = arith.constant 0 : index
      %139 = vector.load %arg10[%c0_113, %c0_114] : memref<120x128xf32, #tpu.memory_space<vmem>>, vector<40x128xf32>
      tpu.vector_store %arg10[%c0_113, %c0_114], %138 {strides = array<i32>} : memref<120x128xf32, #tpu.memory_space<vmem>>, vector<40x128xf32>,
      %c0_115 = arith.constant 0 : index
      %c0_116 = arith.constant 0 : index
      %140 = vector.load %arg10[%c0_115, %c0_116] : memref<120x128xf32, #tpu.memory_space<vmem>>, vector<40x128xf32>
      %c2_117 = arith.constant 2 : index
      %c0_118 = arith.constant 0 : index
      %141 = vector.load %arg9[%c2_117, %c0_118] : memref<48x128xbf16, #tpu.memory_space<vmem>>, vector<40x128xbf16>
      %c2_119 = arith.constant 2 : index
      %c0_120 = arith.constant 0 : index
      %c0_121 = arith.constant 0 : index
      %142 = vector.load %arg5[%c2_119, %c0_120, %c0_121] : memref<5x128x128xbf16, #tpu.memory_space<vmem>>, vector<1x128x128xbf16>
      %143 = vector.shape_cast %142 : vector<1x128x128xbf16> to vector<128x128xbf16>
      %cst_122 = arith.constant dense<0.000000e+00> : vector<40x128xf32>
      %144 = tpu.matmul %141, %143, %cst_122 {dimension_numbers = #tpu.dot_dimension_numbers<[1], [0], [0], [1], [0, 0, 1, 1], [], []>} : vector<40x128xbf16>, vector<128x128xbf16>, vector<40x128xf32> -> vector<40x128xf32>
      %145 = arith.addf %140, %144 : vector<40x128xf32>
      %c0_123 = arith.constant 0 : index
      %c0_124 = arith.constant 0 : index
      %146 = vector.load %arg10[%c0_123, %c0_124] : memref<120x128xf32, #tpu.memory_space<vmem>>, vector<40x128xf32>
      tpu.vector_store %arg10[%c0_123, %c0_124], %145 {strides = array<i32>} : memref<120x128xf32, #tpu.memory_space<vmem>>, vector<40x128xf32>,
      %c0_125 = arith.constant 0 : index
      %c0_126 = arith.constant 0 : index
      %147 = vector.load %arg10[%c0_125, %c0_126] : memref<120x128xf32, #tpu.memory_space<vmem>>, vector<40x128xf32>
      %c3_127 = arith.constant 3 : index
      %c0_128 = arith.constant 0 : index
      %148 = vector.load %arg9[%c3_127, %c0_128] : memref<48x128xbf16, #tpu.memory_space<vmem>>, vector<40x128xbf16>
      %c3_129 = arith.constant 3 : index
      %c0_130 = arith.constant 0 : index
      %c0_131 = arith.constant 0 : index
      %149 = vector.load %arg5[%c3_129, %c0_130, %c0_131] : memref<5x128x128xbf16, #tpu.memory_space<vmem>>, vector<1x128x128xbf16>
      %150 = vector.shape_cast %149 : vector<1x128x128xbf16> to vector<128x128xbf16>
      %cst_132 = arith.constant dense<0.000000e+00> : vector<40x128xf32>
      %151 = tpu.matmul %148, %150, %cst_132 {dimension_numbers = #tpu.dot_dimension_numbers<[1], [0], [0], [1], [0, 0, 1, 1], [], []>} : vector<40x128xbf16>, vector<128x128xbf16>, vector<40x128xf32> -> vector<40x128xf32>
      %152 = arith.addf %147, %151 : vector<40x128xf32>
      %c0_133 = arith.constant 0 : index
      %c0_134 = arith.constant 0 : index
      %153 = vector.load %arg10[%c0_133, %c0_134] : memref<120x128xf32, #tpu.memory_space<vmem>>, vector<40x128xf32>
      tpu.vector_store %arg10[%c0_133, %c0_134], %152 {strides = array<i32>} : memref<120x128xf32, #tpu.memory_space<vmem>>, vector<40x128xf32>,
      %c0_135 = arith.constant 0 : index
      %c0_136 = arith.constant 0 : index
      %154 = vector.load %arg10[%c0_135, %c0_136] : memref<120x128xf32, #tpu.memory_space<vmem>>, vector<40x128xf32>
      %c4_137 = arith.constant 4 : index
      %c0_138 = arith.constant 0 : index
      %155 = vector.load %arg9[%c4_137, %c0_138] : memref<48x128xbf16, #tpu.memory_space<vmem>>, vector<40x128xbf16>
      %c4_139 = arith.constant 4 : index
      %c0_140 = arith.constant 0 : index
      %c0_141 = arith.constant 0 : index
      %156 = vector.load %arg5[%c4_139, %c0_140, %c0_141] : memref<5x128x128xbf16, #tpu.memory_space<vmem>>, vector<1x128x128xbf16>
      %157 = vector.shape_cast %156 : vector<1x128x128xbf16> to vector<128x128xbf16>
      %cst_142 = arith.constant dense<0.000000e+00> : vector<40x128xf32>
      %158 = tpu.matmul %155, %157, %cst_142 {dimension_numbers = #tpu.dot_dimension_numbers<[1], [0], [0], [1], [0, 0, 1, 1], [], []>} : vector<40x128xbf16>, vector<128x128xbf16>, vector<40x128xf32> -> vector<40x128xf32>
      %159 = arith.addf %154, %158 : vector<40x128xf32>
      %c0_143 = arith.constant 0 : index
      %c0_144 = arith.constant 0 : index
      %160 = vector.load %arg10[%c0_143, %c0_144] : memref<120x128xf32, #tpu.memory_space<vmem>>, vector<40x128xf32>
      tpu.vector_store %arg10[%c0_143, %c0_144], %159 {strides = array<i32>} : memref<120x128xf32, #tpu.memory_space<vmem>>, vector<40x128xf32>,
      %c0_145 = arith.constant 0 : index
      %c0_146 = arith.constant 0 : index
      %161 = tpu.strided_load %arg10[%c0_145, %c0_146] {strides = array<i32: 3, 1>} : memref<120x128xf32, #tpu.memory_space<vmem>>, vector<11x128xf32>
      %c1_147 = arith.constant 1 : index
      %c0_148 = arith.constant 0 : index
      %162 = tpu.strided_load %arg10[%c1_147, %c0_148] {strides = array<i32: 3, 1>} : memref<120x128xf32, #tpu.memory_space<vmem>>, vector<11x128xf32>
      %163 = arith.maximumf %161, %162 : vector<11x128xf32>
      %c2_149 = arith.constant 2 : index
      %c0_150 = arith.constant 0 : index
      %164 = tpu.strided_load %arg10[%c2_149, %c0_150] {strides = array<i32: 3, 1>} : memref<120x128xf32, #tpu.memory_space<vmem>>, vector<11x128xf32>
      %165 = arith.maximumf %163, %164 : vector<11x128xf32>
      %c5 = arith.constant 5 : index
      %c0_151 = arith.constant 0 : index
      %166 = vector.load %arg6[%c5, %c0_151] : memref<8x128xf32, #tpu.memory_space<vmem>>, vector<1x128xf32>
      %167 = vector.broadcast %166 : vector<1x128xf32> to vector<11x128xf32>
      %168 = arith.addf %165, %167 : vector<11x128xf32>
      %cst_152 = arith.constant dense<0.000000e+00> : vector<128xf32>
      %169 = vector.multi_reduction <add>, %168, %cst_152 [0] : vector<11x128xf32> to vector<128xf32>
      %170 = vector.shape_cast %169 : vector<128xf32> to vector<1x128xf32>
      %cst_153 = arith.constant 1.100000e+01 : f32
      %171 = vector.broadcast %cst_153 : f32 to vector<1x128xf32>
      %172 = arith.divf %170, %171 : vector<1x128xf32>
      %173 = vector.broadcast %172 : vector<1x128xf32> to vector<11x128xf32>
      %174 = arith.subf %168, %173 : vector<11x128xf32>
      %175 = arith.mulf %174, %174 : vector<11x128xf32>
      %cst_154 = arith.constant dense<0.000000e+00> : vector<128xf32>
      %176 = vector.multi_reduction <add>, %175, %cst_154 [0] : vector<11x128xf32> to vector<128xf32>
      %177 = vector.shape_cast %176 : vector<128xf32> to vector<1x128xf32>
      %cst_155 = arith.constant 1.100000e+01 : f32
      %178 = vector.broadcast %cst_155 : f32 to vector<1x128xf32>
      %179 = arith.divf %177, %178 : vector<1x128xf32>
      %180 = vector.broadcast %172 : vector<1x128xf32> to vector<11x128xf32>
      %181 = arith.subf %168, %180 : vector<11x128xf32>
      %cst_156 = arith.constant 9.99999974E-6 : f32
      %182 = vector.broadcast %cst_156 : f32 to vector<1x128xf32>
      %183 = arith.addf %179, %182 : vector<1x128xf32>
      %184 = math.rsqrt %183 : vector<1x128xf32>
      %185 = vector.broadcast %184 : vector<1x128xf32> to vector<11x128xf32>
      %186 = arith.mulf %181, %185 : vector<11x128xf32>
      %c6 = arith.constant 6 : index
      %c0_157 = arith.constant 0 : index
      %187 = vector.load %arg6[%c6, %c0_157] : memref<8x128xf32, #tpu.memory_space<vmem>>, vector<1x128xf32>
      %188 = vector.broadcast %187 : vector<1x128xf32> to vector<11x128xf32>
      %189 = arith.mulf %186, %188 : vector<11x128xf32>
      %c7 = arith.constant 7 : index
      %c0_158 = arith.constant 0 : index
      %190 = vector.load %arg6[%c7, %c0_158] : memref<8x128xf32, #tpu.memory_space<vmem>>, vector<1x128xf32>
      %191 = vector.broadcast %190 : vector<1x128xf32> to vector<11x128xf32>
      %192 = arith.addf %189, %191 : vector<11x128xf32>
      %cst_159 = arith.constant 0.000000e+00 : f32
      %193 = vector.broadcast %cst_159 : f32 to vector<11x128xf32>
      %194 = arith.cmpf oge, %192, %193 : vector<11x128xf32>
      %cst_160 = arith.constant 0.00999999977 : f32
      %195 = vector.broadcast %cst_160 : f32 to vector<11x128xf32>
      %196 = arith.mulf %195, %192 : vector<11x128xf32>
      %197 = arith.select %194, %192, %196 : vector<11x128xi1>, vector<11x128xf32>
      %c0_161 = arith.constant 0 : index
      %c0_162 = arith.constant 0 : index
      %c0_163 = arith.constant 0 : index
      %198 = vector.load %arg7[%c0_161, %c0_162, %c0_163] : memref<1x11x128xf32, #tpu.memory_space<vmem>>, vector<1x11x128xf32>
      %199 = vector.shape_cast %198 : vector<1x11x128xf32> to vector<11x128xf32>
      %200 = vector.shape_cast %197 : vector<11x128xf32> to vector<1x11x128xf32>
      tpu.vector_store %arg7[%c0_161, %c0_162, %c0_163], %200 {strides = array<i32>} : memref<1x11x128xf32, #tpu.memory_space<vmem>>, vector<1x11x128xf32>,
    } else {
    }
    return
  }
  func.func @transform_0(%arg0: i32, %arg1: i32) -> (i32, i32, i32) {
    %c0_i32 = arith.constant 0 : i32
    %c0_i32_0 = arith.constant 0 : i32
    return %arg0, %arg1, %c0_i32 : i32, i32, i32
  }
  func.func @transform_1(%arg0: i32, %arg1: i32) -> (i32, i32) {
    %c0_i32 = arith.constant 0 : i32
    %c0_i32_0 = arith.constant 0 : i32
    %c0_i32_1 = arith.constant 0 : i32
    return %c0_i32, %c0_i32_0 : i32, i32
  }
  func.func @transform_2(%arg0: i32, %arg1: i32) -> (i32, i32, i32) {
    %c0_i32 = arith.constant 0 : i32
    %c0_i32_0 = arith.constant 0 : i32
    %c0_i32_1 = arith.constant 0 : i32
    %c0_i32_2 = arith.constant 0 : i32
    return %c0_i32, %c0_i32_0, %c0_i32_1 : i32, i32, i32
  }
  func.func @transform_3(%arg0: i32, %arg1: i32) -> (i32, i32, i32) {
    %c0_i32 = arith.constant 0 : i32
    %c0_i32_0 = arith.constant 0 : i32
    %c0_i32_1 = arith.constant 0 : i32
    %c0_i32_2 = arith.constant 0 : i32
    return %c0_i32, %c0_i32_0, %c0_i32_1 : i32, i32, i32
  }
  func.func @transform_4(%arg0: i32, %arg1: i32) -> (i32, i32) {
    %c0_i32 = arith.constant 0 : i32
    %c0_i32_0 = arith.constant 0 : i32
    %c0_i32_1 = arith.constant 0 : i32
    return %c0_i32, %c0_i32_0 : i32, i32
  }
  func.func @transform_5(%arg0: i32, %arg1: i32) -> (i32, i32, i32) {
    %c0_i32 = arith.constant 0 : i32
    %c0_i32_0 = arith.constant 0 : i32
    %c0_i32_1 = arith.constant 0 : i32
    return %arg0, %c0_i32, %c0_i32_0 : i32, i32, i32
  }
}

</mosaic_0001>

<bundles_post_ra>
// kernel: sincnet_forward.1
= control target key start
LH: loop header
LB: loop body
LE: loop exit
PB: predicated region body
PF: predicated region fallthrough
CT: control target
= control target key end

     0   :  { %s4406_s18 = smov 0   ;;  %s4408_s19 = smov 0   ;;  %s5059_s0 = inlined_call_operand.vmem [shape: bf16[2,384,256], index: 0, kind: input, shape index: {}]   ;;  %s5060_s1 = inlined_call_operand.vmem [shape: bf16[256,128], index: 1, kind: input, shape index: {}]   ;;  %s5061_s2 = inlined_call_operand.vmem [shape: bf16[5,128,128], index: 2, kind: input, shape index: {}]   ;;  %s5062_s3 = inlined_call_operand.vmem [shape: bf16[5,128,128], index: 3, kind: input, shape index: {}]   ;;  %s5063_s4 = inlined_call_operand.vmem [shape: f32[8,128], index: 4, kind: input, shape index: {}]   ;;  %s5064_s5 = inlined_call_operand.vmem [shape: f32[2,11,128], index: 5, kind: output, shape index: {}]  }
   0x1   :  { %s4410_s20 = smov 0   ;;  %s4412_s21 = smov 0  }
   0x2   :  { %s4414_s22 = smov 0  }
   0x3 LB: > { %s24_s23 = sadd.s32 1, %s4359_s20  ;;  %s27_s24 = sadd.s32 1, %s4363_s21  ;;  %s4367_s22 = sphi %s4414_s22, %s15_s22   ;;  %s4363_s21 = sphi %s4412_s21, %s5068_s21   ;;  %s4359_s20 = sphi %s4410_s20, %s5067_s20   ;;  %s4355_s19 = sphi %s4408_s19, %s5066_s19   ;;  %s4351_s18 = sphi %s4406_s18, %s5065_s18  }
   0x4   : > { %p25_p0 = scmp.ge.s32.totalorder %s24_s23, 2  ;;  %p3150_p1 = scmp.ge.s32.totalorder %s4367_s22, 1 }
   0x5   : > { %p207_p2 = scmp.lt.s32.totalorder %s4367_s22, 5 }
   0x6   : > { %s5070_s23 = smov (%p25_p0, %s24_s23), 0  ;;  %s5072_s24 = smov (!%p25_p0, %s27_s24), %s4363_s21 }
   0x7   : > { %p208_p3 = pnand %p3150_p1, %p207_p2  ;;  %p29_p4 = scmp.ge.s32.totalorder %s5072_s24, 2 }
   0x8   : > { %s240_s25 = smul.u32 (!%p208_p3), 24, %s4351_s18  ;;  %p241_p5 = scmp.lt.s32.totalorder (!%p208_p3), %s4355_s19, 1 }
   0x9   : > { %s5074_s24 = smov (%p29_p4, %s5072_s24), 0  ;;  %211 = sbr.rel (%p208_p3) target bundleno = 1106 (0x452), region = 40 }
   0xa   : > { %p243_p6 = scmp.lt.s32.totalorder (!%p208_p3), %s240_s25, 47  ;;  %p3155_p7 = scmp.ne.s32.totalorder (!%p208_p3), %s4351_s18, 0 }
   0xe   : > { %s5076_s19 = smov (!%p241_p5, %s4355_s19), 1  ;;  %s5078_s25 = smov (!%p243_p6, %s240_s25), 47 }
   0xf   : > { %s4257_s26 = smul.u32 96, %s5076_s19  ;;  %s3983_s27 = sshll.u32 %s5076_s19, 4 }
  0x10   : > { %s4442_s30 = scalar_lea.vmem %s5064_s5, %s3983_s27  ;;  %s3151_s6 = sshll.u32 %s5078_s25, 1 }
  0x11   : > { %s247_s7 = sadd.s32 %s4257_s26, %s3151_s6  ;;  %259 = sbr.rel (%p3155_p7) target bundleno = 24 (0x18), region = 44 }
  0x12   : > { %s3152_s8 = sshll.u32 %s247_s7, 2 }
  0x13   : > { %s4447_s11 = scalar_lea.vmem %s5059_s0, %s3152_s8 }
  0x16   : > { %v4373_v0 = vmov 0.0  }
  0x17   : > { %260 = vst [vmem:[#allocation5] sm:$0x3] %v4373_v0 }
  0x18 PF: > { %v4015_v1 = vld [vmem:[%s5060_s1 + $0x38] sm:$0xff]  ;;  %v4014_v3 = vld [vmem:[%s5060_s1 + $0x30] sm:$0xff]  ;;  %v4013_v5 = vld [vmem:[%s5060_s1 + $0x28] sm:$0xff]  ;;  %p3318_p8 = scmp.ne.s32.totalorder %s4351_s18, 1 }
  0x19   : > { %v4023_v2 = vld [vmem:[%s5060_s1 + $0x78] sm:$0xff]  ;;  %533 = vmatpush.bf16.msra.mxu0 %v4015_v1  ;;  %4233 = vmatpush.bf16.msra.mxu2 %v4015_v1  ;;  %v4022_v4 = vld [vmem:[%s5060_s1 + $0x70] sm:$0xff]  ;;  %v4021_v6 = vld [vmem:[%s5060_s1 + $0x68] sm:$0xff]  ;;  %s4631_s16 = smov (!%p3318_p8), 0  }
  0x1a   : > { %602 = vmatpush.bf16.msra.mxu1 %v4023_v2  ;;  %4241 = vmatpush.bf16.msra.mxu3 %v4023_v2  ;;  %v4012_v7 = vld [vmem:[%s5060_s1 + $0x20] sm:$0xff]  ;;  %v4011_v9 = vld [vmem:[%s5060_s1 + $0x18] sm:$0xff]  ;;  %v4010_v11 = vld [vmem:[%s5060_s1 + $0x10] sm:$0xff] }
  0x1b   : > { %v4020_v8 = vld [vmem:[%s5060_s1 + $0x60] sm:$0xff]  ;;  %v4019_v10 = vld [vmem:[%s5060_s1 + $0x58] sm:$0xff]  ;;  %v4018_v12 = vld [vmem:[%s5060_s1 + $0x50] sm:$0xff] }
  0x1c   : > { %v4009_v13 = vld [vmem:[%s5060_s1 + $0x8] sm:$0xff]  ;;  %v4008_v15 = vld [vmem:[%s5060_s1] sm:$0xff]  ;;  %v3166_v29 = vld [vmem:[%s4447_s11 + $0x10] sm:$0xf] }
  0x1d   : > { %534 = vmatpush.bf16.msra.mxu0 %v4014_v3  ;;  %4234 = vmatpush.bf16.msra.mxu2 %v4014_v3  ;;  %v4017_v14 = vld [vmem:[%s5060_s1 + $0x48] sm:$0xff]  ;;  %v4016_v16 = vld [vmem:[%s5060_s1 + $0x40] sm:$0xff]  ;;  %v3987_v30 = vld [vmem:[%s4447_s11 + $0x14] sm:$0xf0] }
  0x1e   : > { %603 = vmatpush.bf16.msra.mxu1 %v4022_v4  ;;  %4242 = vmatpush.bf16.msra.mxu3 %v4022_v4  ;;  %v3158_v17 = vld [vmem:[%s4447_s11] sm:$0xf]  ;;  %v3985_v18 = vld [vmem:[%s4447_s11 + $0x4] sm:$0xf0]  ;;  %v3984_v21 = vld [vmem:[%s4447_s11 + $0x4] sm:$0xf]  ;;  %v3167_v37 = vor.u32 %v3987_v30, %v3166_v29 }
  0x1f   : > { %v3206_v19 = vld [vmem:[%s4447_s11 + $0x60] sm:$0xf]  ;;  %v3997_v20 = vld [vmem:[%s4447_s11 + $0x64] sm:$0xf0]  ;;  %v3160_v22 = vld [vmem:[%s4447_s11 + $0x8] sm:$0xf0]  ;;  %v3159_v25 = vor.u32 %v3985_v18, %v3158_v17 }
  0x20   : > { %v3996_v23 = vld [vmem:[%s4447_s11 + $0x64] sm:$0xf]  ;;  %v3208_v24 = vld [vmem:[%s4447_s11 + $0x68] sm:$0xf0]  ;;  %v3207_v26 = vor.u32 %v3997_v20, %v3206_v19  ;;  %v3163_v27 = vor.u32 %v3984_v21, %v3160_v22  ;;  %v3214_v31 = vld [vmem:[%s4447_s11 + $0x70] sm:$0xf] }
  0x21   : > { %535 = vmatpush.bf16.msra.mxu0 %v4013_v5  ;;  %4235 = vmatpush.bf16.msra.mxu2 %v4013_v5  ;;  %v3211_v28 = vor.u32 %v3996_v23, %v3208_v24  ;;  %v3999_v32 = vld [vmem:[%s4447_s11 + $0x74] sm:$0xf0]  ;;  %v3986_v33 = vld [vmem:[%s4447_s11 + $0x14] sm:$0xf]  ;;  %v3168_v34 = vld [vmem:[%s4447_s11 + $0x18] sm:$0xf0] }
  0x22   : > { %604 = vmatpush.bf16.msra.mxu1 %v4021_v6  ;;  %4243 = vmatpush.bf16.msra.mxu3 %v4021_v6  ;;  %v3998_v35 = vld [vmem:[%s4447_s11 + $0x74] sm:$0xf]  ;;  %v3216_v36 = vld [vmem:[%s4447_s11 + $0x78] sm:$0xf0]  ;;  %v3215_v38 = vor.u32 %v3999_v32, %v3214_v31  ;;  %v3171_v39 = vor.u32 %v3986_v33, %v3168_v34  ;;  %v3174_v41 = vld [vmem:[%s4447_s11 + $0x20] sm:$0xf] }
  0x23   : > { %v3219_v40 = vor.u32 %v3998_v35, %v3216_v36  ;;  %v3989_v42 = vld [vmem:[%s4447_s11 + $0x24] sm:$0xf0]  ;;  %v3222_v43 = vld [vmem:[%s4447_s11 + $0x80] sm:$0xf]  ;;  %v3988_v45 = vld [vmem:[%s4447_s11 + $0x24] sm:$0xf] }
  0x24   : > { %v4001_v44 = vld [vmem:[%s4447_s11 + $0x84] sm:$0xf0]  ;;  %v3176_v46 = vld [vmem:[%s4447_s11 + $0x28] sm:$0xf0]  ;;  %v4000_v47 = vld [vmem:[%s4447_s11 + $0x84] sm:$0xf]  ;;  %v3175_v49 = vor.u32 %v3989_v42, %v3174_v41 }
  0x25   : > { %536 = vmatpush.bf16.msra.mxu0 %v4012_v7  ;;  %4236 = vmatpush.bf16.msra.mxu2 %v4012_v7  ;;  %v3224_v48 = vld [vmem:[%s4447_s11 + $0x88] sm:$0xf0]  ;;  %v3223_v50 = vor.u32 %v4001_v44, %v3222_v43  ;;  %v3179_v51 = vor.u32 %v3988_v45, %v3176_v46  ;;  %v3182_v53 = vld [vmem:[%s4447_s11 + $0x30] sm:$0xf]  ;;  %v3991_v54 = vld [vmem:[%s4447_s11 + $0x34] sm:$0xf0] }
  0x26   : > { %605 = vmatpush.bf16.msra.mxu1 %v4020_v8  ;;  %4244 = vmatpush.bf16.msra.mxu3 %v4020_v8  ;;  %v3227_v52 = vor.u32 %v4000_v47, %v3224_v48  ;;  %v3230_v55 = vld [vmem:[%s4447_s11 + $0x90] sm:$0xf]  ;;  %v4003_v56 = vld [vmem:[%s4447_s11 + $0x94] sm:$0xf0]  ;;  %v3990_v57 = vld [vmem:[%s4447_s11 + $0x34] sm:$0xf]  ;;  %v3183_v61 = vor.u32 %v3991_v54, %v3182_v53 }
  0x27   : > { %v3184_v58 = vld [vmem:[%s4447_s11 + $0x38] sm:$0xf0]  ;;  %v4002_v59 = vld [vmem:[%s4447_s11 + $0x94] sm:$0xf]  ;;  %v3231_v62 = vor.u32 %v4003_v56, %v3230_v55  ;;  %v3190_v1 = vld [vmem:[%s4447_s11 + $0x40] sm:$0xf] }
  0x28   : > { %v3232_v60 = vld [vmem:[%s4447_s11 + $0x98] sm:$0xf0]  ;;  %v3187_v63 = vor.u32 %v3990_v57, %v3184_v58  ;;  %v3993_v2 = vld [vmem:[%s4447_s11 + $0x44] sm:$0xf0]  ;;  %v3238_v3 = vld [vmem:[%s4447_s11 + $0xa0] sm:$0xf] }
  0x29   : > { %537 = vmatpush.bf16.msra.mxu0 %v4011_v9  ;;  %4237 = vmatpush.bf16.msra.mxu2 %v4011_v9  ;;  %v3235_v0 = vor.u32 %v4002_v59, %v3232_v60  ;;  %v4005_v4 = vld [vmem:[%s4447_s11 + $0xa4] sm:$0xf0]  ;;  %v3992_v5 = vld [vmem:[%s4447_s11 + $0x44] sm:$0xf]  ;;  %v3192_v6 = vld [vmem:[%s4447_s11 + $0x48] sm:$0xf0]  ;;  %v3191_v9 = vor.u32 %v3993_v2, %v3190_v1  ;;  %v712_v1 = vlaneseq }
  0x2a   : > { %606 = vmatpush.bf16.msra.mxu1 %v4019_v10  ;;  %4245 = vmatpush.bf16.msra.mxu3 %v4019_v10  ;;  %v4004_v7 = vld [vmem:[%s4447_s11 + $0xa4] sm:$0xf]  ;;  %v3240_v8 = vld [vmem:[%s4447_s11 + $0xa8] sm:$0xf0]  ;;  %v3239_v10 = vor.u32 %v4005_v4, %v3238_v3  ;;  %v3994_v17 = vld [vmem:[%s4447_s11 + $0x54] sm:$0xf] }
  0x2b   : > { %v3200_v18 = vld [vmem:[%s4447_s11 + $0x58] sm:$0xf0]  ;;  %v4006_v19 = vld [vmem:[%s4447_s11 + $0xb4] sm:$0xf]  ;;  %v4573_v4 = vshrl.u32 %v712_v1, 7 }
  0x2c   : > { %v3248_v20 = vld [vmem:[%s4447_s11 + $0xb8] sm:$0xf0]  ;;  %v3203_v23 = vor.u32 %v3994_v17, %v3200_v18 }
  0x2d   : > { %538 = vmatpush.bf16.msra.mxu0 %v4010_v11  ;;  %4238 = vmatpush.bf16.msra.mxu2 %v4010_v11  ;;  %v3195_v11 = vor.u32 %v3992_v5, %v3192_v6  ;;  %v3251_v24 = vor.u32 %v4006_v19, %v3248_v20 }
  0x2e   : > { %607 = vmatpush.bf16.msra.mxu1 %v4018_v12  ;;  %4246 = vmatpush.bf16.msra.mxu3 %v4018_v12  ;;  %v3243_v12 = vor.u32 %v4004_v7, %v3240_v8 }
  0x31   : > { %539 = vmatpush.bf16.msra.mxu0 %v4009_v13  ;;  %4239 = vmatpush.bf16.msra.mxu2 %v4009_v13  ;;  %v3198_v13 = vld [vmem:[%s4447_s11 + $0x50] sm:$0xf] }
  0x32   : > { %608 = vmatpush.bf16.msra.mxu1 %v4017_v14  ;;  %4247 = vmatpush.bf16.msra.mxu3 %v4017_v14  ;;  %v3995_v14 = vld [vmem:[%s4447_s11 + $0x54] sm:$0xf0] }
  0x33   : > { %v3199_v21 = vor.u32 %v3995_v14, %v3198_v13 }
  0x35   : > { %540 = vmatpush.bf16.msra.mxu0 %v4008_v15  ;;  %4240 = vmatpush.bf16.msra.mxu2 %v4008_v15  ;;  %v3246_v15 = vld [vmem:[%s4447_s11 + $0xb0] sm:$0xf] }
  0x36   : > { %609 = vmatpush.bf16.msra.mxu1 %v4016_v16  ;;  %4248 = vmatpush.bf16.msra.mxu3 %v4016_v16  ;;  %v4007_v16 = vld [vmem:[%s4447_s11 + $0xb4] sm:$0xf0]  ;;  %s3316_s11 = sshll.u32 %s4351_s18, 6 }
  0x37   : > { %v3247_v22 = vor.u32 %v4007_v16, %v3246_v15  ;;  %v4575_v7 = vstv %s3316_s11  ;;  %s4581_s9 = sshra.s32 %s3316_s11, 3 }
  0x38   : > { %541 = vmatmul.bf16.vlgmr.msra.gmra.mxu0 %v3159_v25  ;;  %571 = vmatmul.bf16.vlgmr.msra.gmra.mxu2 %v3207_v26  ;;  %v722_v15 = vadd.s32 %v4575_v7, %v4573_v4  ;;  %s3317_s10 = sshll.u32 %s4581_s9, 2 }
  0x39   : > { %610 = vmatmul.bf16.vlgmr.msra.gmra.mxu1 %v3163_v27  ;;  %640 = vmatmul.bf16.vlgmr.msra.gmra.mxu3 %v3211_v28  ;;  %s4589_s12 = scalar_lea.vmem [#allocation2], %s3317_s10 }
  0x3a   : > { %vm730_vm0 = vcmp.lt.s32.totalorder %v722_v15, 117 }
  0x48   : > { %546 = vmatmul.bf16.gmra.mxu0 %v3167_v37  ;;  %576 = vmatmul.bf16.gmra.mxu2 %v3215_v38 }
  0x49   : > { %615 = vmatmul.bf16.gmra.mxu1 %v3171_v39  ;;  %645 = vmatmul.bf16.gmra.mxu3 %v3219_v40 }
  0x58   : > { %551 = vmatmul.bf16.gmra.mxu0 %v3175_v49  ;;  %581 = vmatmul.bf16.gmra.mxu2 %v3223_v50 }
  0x59   : > { %620 = vmatmul.bf16.gmra.mxu1 %v3179_v51  ;;  %650 = vmatmul.bf16.gmra.mxu3 %v3227_v52 }
  0x68   : > { %556 = vmatmul.bf16.gmra.mxu0 %v3183_v61  ;;  %586 = vmatmul.bf16.gmra.mxu2 %v3231_v62 }
  0x69   : > { %625 = vmatmul.bf16.gmra.mxu1 %v3187_v63  ;;  %655 = vmatmul.bf16.gmra.mxu3 %v3235_v0 }
  0x78   : > { %561 = vmatmul.bf16.gmra.mxu0 %v3191_v9  ;;  %591 = vmatmul.bf16.gmra.mxu2 %v3239_v10  ;;  %v714_v10 = vadd.s32 8, %v4573_v4 }
  0x79   : > { %630 = vmatmul.bf16.gmra.mxu1 %v3195_v11  ;;  %660 = vmatmul.bf16.gmra.mxu3 %v3243_v12 }
  0x88   : > { %566 = vmatmul.bf16.gmra.mxu0 %v3199_v21  ;;  %596 = vmatmul.bf16.gmra.mxu2 %v3247_v22  ;;  %v723_v21 = vadd.s32 %v4575_v7, %v714_v10 }
  0x89   : > { %635 = vmatmul.bf16.gmra.mxu1 %v3203_v23  ;;  %665 = vmatmul.bf16.gmra.mxu3 %v3251_v24 }
  0x8a   : > { %vm731_vm1 = vcmp.lt.s32.totalorder %v723_v21, 117 }
  0xb5   : > { %v542_v25 = vpop.f32.mrf.mxu0 }
  0xb6   : > { %v611_v26 = vpop.f32.mrf.mxu1 }
  0xb7   : > { %v612_v27 = vadd.f32 %v611_v26, %v542_v25 }
  0xb9   : > { %v671_v5 = vand.u32 2147483647, %v612_v27 }
  0xbb   : > { %v572_v28 = vpop.f32.mrf.mxu2 }
  0xbc   : > { %v641_v29 = vpop.f32.mrf.mxu3 }
  0xbd   : > { %v4546_v30 = vadd.f32 %v641_v29, %v572_v28  ;;  %v544_v31 = vpop.f32.mrf.mxu0 }
  0xbe   : > { %v613_v32 = vpop.f32.mrf.mxu1 }
  0xbf   : > { %v4548_v33 = vadd.f32 %v613_v32, %v544_v31  ;;  %v683_v32 = vand.u32 2147483647, %v4546_v30 }
  0xc1   : > { %v672_v22 = vand.u32 2147483647, %v4548_v33 }
  0xc3   : > { %v574_v34 = vpop.f32.mrf.mxu2 }
  0xc4   : > { %v643_v35 = vpop.f32.mrf.mxu3 }
  0xc5   : > { %v547_v36 = vpop.f32.mrf.mxu0  ;;  %v644_v20 = vadd.f32 %v643_v35, %v574_v34 }
  0xc6   : > { %v616_v37 = vpop.f32.mrf.mxu1 }
  0xc7   : > { %v4550_v38 = vadd.f32 %v616_v37, %v547_v36  ;;  %v684_v34 = vand.u32 2147483647, %v644_v20  ;;  %v715_v36 = vadd.s32 16, %v4573_v4 }
  0xc9   : > { %v673_v1 = vand.u32 2147483647, %v4550_v38 }
  0xcb   : > { %v577_v39 = vpop.f32.mrf.mxu2 }
  0xcc   : > { %v646_v40 = vpop.f32.mrf.mxu3 }
  0xcd   : > { %v4552_v41 = vadd.f32 %v646_v40, %v577_v39  ;;  %v549_v42 = vpop.f32.mrf.mxu0 }
  0xce   : > { %v618_v43 = vpop.f32.mrf.mxu1 }
  0xcf   : > { %v4554_v44 = vadd.f32 %v618_v43, %v549_v42  ;;  %v685_v38 = vand.u32 2147483647, %v4552_v41 }
  0xd3   : > { %v4556_v45 = vpop.f32.mrf.mxu2 }
  0xd4   : > { %v4558_v46 = vpop.f32.mrf.mxu3 }
  0xd5   : > { %v552_v47 = vpop.f32.mrf.mxu0 }
  0xd6   : > { %v621_v48 = vpop.f32.mrf.mxu1 }
  0xd7   : > { %v622_v13 = vadd.f32 %v621_v48, %v552_v47 }
  0xd9   : > { %v675_v26 = vand.u32 2147483647, %v622_v13 }
  0xdb   : > { %v582_v49 = vpop.f32.mrf.mxu2  ;;  %v699_v43 = vmax.f32 %v675_v26, %v683_v32 }
  0xdc   : > { %v651_v50 = vpop.f32.mrf.mxu3 }
  0xdd   : > { %v554_v51 = vpop.f32.mrf.mxu0  ;;  %v652_v6 = vadd.f32 %v651_v50, %v582_v49 }
  0xde   : > { %v623_v52 = vpop.f32.mrf.mxu1 }
  0xdf   : > { %v624_v14 = vadd.f32 %v623_v52, %v554_v51  ;;  %v687_v17 = vand.u32 2147483647, %v652_v6 }
  0xe1   : > { %v676_v27 = vand.u32 2147483647, %v624_v14 }
  0xe3   : > { %v584_v53 = vpop.f32.mrf.mxu2  ;;  %v700_v47 = vmax.f32 %v676_v27, %v684_v34 }
  0xe4   : > { %v653_v54 = vpop.f32.mrf.mxu3 }
  0xe5   : > { %v4560_v55 = vpop.f32.mrf.mxu0  ;;  %v654_v18 = vadd.f32 %v653_v54, %v584_v53 }
  0xe6   : > { %v4562_v56 = vpop.f32.mrf.mxu1 }
  0xe7   : > { %v688_v28 = vand.u32 2147483647, %v654_v18  ;;  %v627_v13 = vadd.f32 %v4562_v56, %v4560_v55 }
  0xeb   : > { %v587_v57 = vpop.f32.mrf.mxu2 }
  0xec   : > { %v656_v58 = vpop.f32.mrf.mxu3 }
  0xed   : > { %v4564_v59 = vpop.f32.mrf.mxu0  ;;  %v657_v48 = vadd.f32 %v656_v58, %v587_v57  ;;  %v717_v58 = vadd.s32 32, %v4573_v4 }
  0xee   : > { %v4566_v60 = vpop.f32.mrf.mxu1 }
  0xef   : > { %v689_v6 = vand.u32 2147483647, %v657_v48  ;;  %v726_v18 = vadd.s32 %v4575_v7, %v717_v58 }
  0xf1   : > { %vm734_vm3 = vcmp.lt.s32.totalorder %v726_v18, 117  ;;  %v746_v18 = vld [vmem:[#allocation5] sm:$0x1] }
  0xf3   : > { %v4568_v61 = vpop.f32.mrf.mxu2 }
  0xf4   : > { %v4570_v62 = vpop.f32.mrf.mxu3 }
  0xf5   : > { %v562_v63 = vpop.f32.mrf.mxu0  ;;  %v659_v41 = vadd.f32 %v4570_v62, %v4568_v61 }
  0xf6   : > { %v631_v0 = vpop.f32.mrf.mxu1 }
  0xf7   : > { %v632_v2 = vadd.f32 %v631_v0, %v562_v63  ;;  %v724_v0 = vadd.s32 %v4575_v7, %v715_v36  ;;  %v690_v61 = vand.u32 2147483647, %v659_v41  ;;  %v762_v41 = vld [vmem:[#allocation5 + $0x1] sm:$0x1] }
  0xf9   : > { %v679_v3 = vand.u32 2147483647, %v632_v2  ;;  %vm732_vm2 = vcmp.lt.s32.totalorder %v724_v0, 117 }
  0xfb   : > { %v592_v8 = vpop.f32.mrf.mxu2  ;;  %v695_v11 = vmax.f32 %v671_v5, %v679_v3 }
  0xfc   : > { %v661_v9 = vpop.f32.mrf.mxu3 }
  0xfd   : > { %v564_v12 = vpop.f32.mrf.mxu0  ;;  %v703_v23 = vmax.f32 %v695_v11, %v687_v17  ;;  %v662_v24 = vadd.f32 %v661_v9, %v592_v8  ;;  %v629_v17 = vadd.f32 %v4566_v60, %v4564_v59  ;;  %v677_v59 = vand.u32 2147483647, %v627_v13 }
  0xfe   : > { %v633_v16 = vpop.f32.mrf.mxu1 }
  0xff   : > { %v634_v19 = vadd.f32 %v633_v16, %v564_v12  ;;  %v738_v37 = vsel %vm730_vm0, %v703_v23, 0.0  ;;  %v691_v39 = vand.u32 2147483647, %v662_v24  ;;  %v716_v12 = vadd.s32 24, %v4573_v4 }
 0x100   : > { %v763_v54 = vmul.f32 %v738_v37, %v738_v37  ;;  %v649_v16 = vadd.f32 %v4558_v46, %v4556_v45  ;;  %v719_v24 = vadd.s32 48, %v4573_v4  ;;  %v674_v46 = vand.u32 2147483647, %v4554_v44 }
 0x101   : > { %v680_v25 = vand.u32 2147483647, %v634_v19  ;;  %v707_v2 = vmax.f32 %v699_v43, %v691_v39  ;;  %v718_v19 = vadd.s32 40, %v4573_v4  ;;  %v725_v45 = vadd.s32 %v4575_v7, %v716_v12 }
 0x102   : > { %v686_v32 = vand.u32 2147483647, %v649_v16  ;;  %v728_v34 = vadd.s32 %v4575_v7, %v719_v24  ;;  %v701_v44 = vmax.f32 %v677_v59, %v685_v38 }
 0x103   : > { %v696_v29 = vmax.f32 %v672_v22, %v680_v25  ;;  %v594_v31 = vpop.f32.mrf.mxu2  ;;  %v678_v25 = vand.u32 2147483647, %v629_v17  ;;  %v727_v26 = vadd.s32 %v4575_v7, %v718_v19  ;;  %vm733_vm4 = vcmp.lt.s32.totalorder %v725_v45, 117 }
 0x104   : > { %v663_v35 = vpop.f32.mrf.mxu3  ;;  %vm736_vm6 = vcmp.lt.s32.totalorder %v728_v34, 117 }
 0x105   : > { %v704_v33 = vmax.f32 %v696_v29, %v688_v28  ;;  %v664_v40 = vadd.f32 %v663_v35, %v594_v31  ;;  %v567_v42 = vpop.f32.mrf.mxu0  ;;  %v720_v28 = vadd.s32 56, %v4573_v4  ;;  %v702_v39 = vmax.f32 %v678_v25, %v686_v32 }
 0x106   : > { %v636_v49 = vpop.f32.mrf.mxu1  ;;  %vm735_vm5 = vcmp.lt.s32.totalorder %v727_v26, 117 }
 0x107   : > { %v739_v50 = vsel %vm731_vm1, %v704_v33, 0.0  ;;  %v4160_v51 = vpack.c.bf16 %v704_v33, %v703_v23  ;;  %v692_v52 = vand.u32 2147483647, %v664_v40  ;;  %v637_v53 = vadd.f32 %v636_v49, %v567_v42 }
 0x108   : > { %v747_v30 = vadd.f32 %v739_v50, %v738_v37  ;;  %v764_v63 = vmul.f32 %v739_v50, %v739_v50  ;;  %v742_v33 = vsel %vm734_vm3, %v707_v2, 0.0  ;;  %v729_v40 = vadd.s32 %v4575_v7, %v720_v28 }
 0x109   : > { %4161 = vst [vmem:[%s4589_s12] sm:$0xff] %v4160_v51   ;;  %v708_v3 = vmax.f32 %v700_v47, %v692_v52  ;;  %v681_v57 = vand.u32 2147483647, %v637_v53  ;;  %v767_v52 = vmul.f32 %v742_v33, %v742_v33 }
 0x10a   : > { %v771_v5 = vadd.f32 %v764_v63, %v763_v54  ;;  %vm737_vm7 = vcmp.lt.s32.totalorder %v729_v40, 117 }
 0x10b   : > { %v4170_v8 = vpack.c.bf16 %v708_v3, %v707_v2  ;;  %v697_v9 = vmax.f32 %v673_v1, %v681_v57  ;;  %v597_v10 = vpop.f32.mrf.mxu2  ;;  %v743_v50 = vsel %vm735_vm5, %v708_v3, 0.0 }
 0x10c   : > { %v666_v11 = vpop.f32.mrf.mxu3  ;;  %v768_v0 = vmul.f32 %v743_v50, %v743_v50 }
 0x10d   : > { %4224 = vst [vmem:[%s4589_s12 + $0x10] sm:$0xff] %v4170_v8   ;;  %v705_v14 = vmax.f32 %v697_v9, %v689_v6  ;;  %v569_v15 = vpop.f32.mrf.mxu0  ;;  %v667_v22 = vadd.f32 %v666_v11, %v597_v10 }
 0x10e   : > { %v638_v20 = vpop.f32.mrf.mxu1 }
 0x10f   : > { %v740_v21 = vsel %vm732_vm2, %v705_v14, 0.0  ;;  %v639_v55 = vadd.f32 %v638_v20, %v569_v15  ;;  %v693_v62 = vand.u32 2147483647, %v667_v22 }
 0x110   : > { %v748_v56 = vadd.f32 %v747_v30, %v740_v21  ;;  %v765_v23 = vmul.f32 %v740_v21, %v740_v21 }
 0x111   : > { %v682_v60 = vand.u32 2147483647, %v639_v55  ;;  %v709_v4 = vmax.f32 %v701_v44, %v693_v62 }
 0x112   : > { %v772_v27 = vadd.f32 %v771_v5, %v765_v23 }
 0x113   : > { %v698_v29 = vmax.f32 %v674_v46, %v682_v60  ;;  %v599_v31 = vpop.f32.mrf.mxu2  ;;  %v744_v30 = vsel %vm736_vm6, %v709_v4, 0.0 }
 0x114   : > { %v668_v35 = vpop.f32.mrf.mxu3  ;;  %v769_v57 = vmul.f32 %v744_v30, %v744_v30 }
 0x115   : > { %v706_v36 = vmax.f32 %v698_v29, %v690_v61  ;;  %v669_v37 = vadd.f32 %v668_v35, %v599_v31 }
 0x117   : > { %v741_v42 = vsel %vm733_vm4, %v706_v36, 0.0  ;;  %v4165_v43 = vpack.c.bf16 %v706_v36, %v705_v14  ;;  %v694_v47 = vand.u32 2147483647, %v669_v37 }
 0x118   : > { %v749_v48 = vadd.f32 %v748_v56, %v741_v42  ;;  %v766_v49 = vmul.f32 %v741_v42, %v741_v42 }
 0x119   : > { %4223 = vst [vmem:[%s4589_s12 + $0x8] sm:$0xff] %v4165_v43   ;;  %v710_v51 = vmax.f32 %v702_v39, %v694_v47 }
 0x11a   : > { %v750_v53 = vadd.f32 %v749_v48, %v742_v33  ;;  %v773_v54 = vadd.f32 %v772_v27, %v766_v49 }
 0x11b   : > { %v4175_v63 = vpack.c.bf16 %v710_v51, %v709_v4  ;;  %v745_v2 = vsel %vm737_vm7, %v710_v51, 0.0 }
 0x11c   : > { %v774_v1 = vadd.f32 %v773_v54, %v767_v52  ;;  %v751_v7 = vadd.f32 %v750_v53, %v743_v50  ;;  %v770_v8 = vmul.f32 %v745_v2, %v745_v2 }
 0x11d   : > { %4225 = vst [vmem:[%s4589_s12 + $0x18] sm:$0xff] %v4175_v63  }
 0x11e   : > { %v752_v58 = vadd.f32 %v751_v7, %v744_v30  ;;  %v775_v5 = vadd.f32 %v774_v1, %v768_v0 }
 0x120   : > { %v753_v6 = vadd.f32 %v752_v58, %v745_v2  ;;  %v776_v9 = vadd.f32 %v775_v5, %v769_v57 }
 0x122   : > { %v754_v3 = vrot.slane %v753_v6, 4  ;;  %v777_v10 = vadd.f32 %v776_v9, %v770_v8 }
 0x124   : > { %v755_v11 = vadd.f32 %v754_v3, %v753_v6  ;;  %v778_v12 = vrot.slane %v777_v10, 4 }
 0x126   : > { %v756_v38 = vrot.slane %v755_v11, 2  ;;  %v779_v13 = vadd.f32 %v778_v12, %v777_v10 }
 0x128   : > { %v757_v14 = vadd.f32 %v756_v38, %v755_v11  ;;  %v780_v15 = vrot.slane %v779_v13, 2 }
 0x12a   : > { %v758_v16 = vrot.slane %v757_v14, 1  ;;  %v781_v17 = vadd.f32 %v780_v15, %v779_v13 }
 0x12c   : > { %v759_v19 = vadd.f32 %v758_v16, %v757_v14  ;;  %v782_v20 = vrot.slane %v781_v17, 1 }
 0x12e   : > { %v760_v21 = vadd.f32 %v759_v19, %v746_v18  ;;  %v783_v22 = vadd.f32 %v782_v20, %v781_v17  ;;  %809 = sbr.rel (%p3318_p8) target bundleno = 1106 (0x452), region = 48 }
 0x130   : > { %761 = vst [vmem:[#allocation5] sm:$0x1] %v760_v21  ;;  %v784_v55 = vadd.f32 %v783_v22, %v762_v41 }
 0x132   : > { %785 = vst [vmem:[#allocation5 + $0x1] sm:$0x1] %v784_v55 }
 0x133   : > { %v827_v29 = vld [vmem:[%s5063_s4] sm:$0x1]  ;;  %v4624_v34 = vld [vmem:[%s5063_s4 + $0x1] sm:$0x1] }
 0x137   : > { %v810_v56 = vld [vmem:[#allocation5] sm:$0x1] }
 0x138   : > { %v811_v24 = vmul.f32 0.008547009, %v810_v56 }
 0x139   : > { %v812_v23 = vld [vmem:[#allocation5 + $0x1] sm:$0x1] }
 0x13a   : > { %v813_v45 = vmul.f32 0.008547009, %v812_v23  ;;  %v814_v46 = vmul.f32 %v811_v24, %v811_v24 }
 0x13c   : > { %v815_v59 = vsub.f32 %v813_v45, %v814_v46 }
 0x13e   : > { %v816_v60 = vadd.f32 1e-05, %v815_v59 }
 0x140   : > { %4309 = vrsqrt.f32 %v816_v60  ;;  %vm823_vm8 = vweird.f32 %v816_v60 }
 0x146   : > { %v4310_v25 = vpop.eup %4309 }
 0x147   : > { %v818_v26 = vmul.f32 %v4310_v25, %v816_v60  ;;  %vm824_vm9 = vweird.f32 %v4310_v25 }
 0x148   : > { %vm825_vm10 = vmor %vm823_vm8, %vm824_vm9 }
 0x149   : > { %v819_v27 = vmul.f32 %v4310_v25, %v818_v26 }
 0x14b   : > { %v820_v28 = vmul.f32 0.5, %v819_v27 }
 0x14d   : > { %v821_v61 = vsub.f32 1.5, %v820_v28 }
 0x14f   : > { %v822_v62 = vmul.f32 %v4310_v25, %v821_v61 }
 0x151   : > { %v826_v31 = vsel %vm825_vm10, %v4310_v25, %v822_v62 }
 0x152   : > { %v4619_v32 = vmul.f32 %v827_v29, %v826_v31 }
 0x154   : > { %v4627_v35 = vmul.f32 %v4619_v32, %v811_v24 }
 0x156   : > { %v831_v44 = vsub.f32 %v4624_v34, %v4627_v35 }
 0x157 LB: >> { %s3319_s17 = sshll.u32 %s4371_s16, 6  ;;  %v859_v36 = vperm.slane %v4619_v32, 0  ;;  %s837_s16 = sadd.s32 1, %s4371_s16   ;;  %s4371_s16 = sphi %s4631_s16, %s837_s16  }
 0x158   : >> { %s839_s19 = sshra.s32 %s3319_s17, 3  ;;  %v868_v39 = vperm.slane %v831_v44, 0  ;;  %p834_p9 = scmp.ge.s32.totalorder %s837_s16, 2  }
 0x159   : >> { %s3320_s25 = sshll.u32 %s839_s19, 2  ;;  %v4038_v59 = vld [vmem:[%s5061_s2 + $0x38] sm:$0xff] (%p834_p9)  ;;  %v4037_v26 = vld [vmem:[%s5061_s2 + $0x30] sm:$0xff] (%p834_p9)  ;;  %v4036_v61 = vld [vmem:[%s5061_s2 + $0x28] sm:$0xff] (%p834_p9)  ;;  %vm1193_vm3 = vsmask.f32 (%p834_p9), 7424 }
 0x15a   : >> { %s4638_s26 = scalar_lea.vmem [#allocation2], %s3320_s25  ;;  %v4054_v60 = vld [vmem:[%s5061_s2 + $0x78] sm:$0xff] (%p834_p9)  ;;  %1042 = vmatpush.bf16.msra.mxu0 (%p834_p9), %v4038_v59  ;;  %4249 = vmatpush.bf16.msra.mxu3 (%p834_p9), %v4038_v59  ;;  %v4053_v27 = vld [vmem:[%s5061_s2 + $0x70] sm:$0xff] (%p834_p9)  ;;  %v4052_v62 = vld [vmem:[%s5061_s2 + $0x68] sm:$0xff] (%p834_p9)  ;;  %vm1479_vm4 = vcmask (%p834_p9), 1046528   ;;  %vm2011_vm6 = vcmask (%p834_p9), 1045504  }
 0x15b   : >> { %v4178_v37 = vld [vmem:[%s4638_s26] sm:$0xff]   ;;  %v4226_v33 = vld [vmem:[%s4638_s26 + $0x8] sm:$0xff]   ;;  %v4227_v40 = vld [vmem:[%s4638_s26 + $0x10] sm:$0xff]   ;;  %1313 = vmatpush.bf16.msra.mxu1 (%p834_p9), %v4054_v60  ;;  %vm1717_vm5 = vsmask.f32 (%p834_p9), 6400  ;;  %vm2210_vm7 = vcmask (%p834_p9), 1044480  }
 0x15c   : >> { %v4179_v4 = vunpack.c.l.bf16 %v4178_v37  ;;  %v4180_v42 = vunpack.c.h.bf16 %v4178_v37  ;;  %v4183_v43 = vunpack.c.l.bf16 %v4226_v33  ;;  %v4184_v47 = vunpack.c.h.bf16 %v4226_v33  ;;  %v4228_v48 = vld [vmem:[%s4638_s26 + $0x18] sm:$0xff]   ;;  %v4069_v28 = vld [vmem:[%s5061_s2 + $0xb0] sm:$0xff] (%p834_p9)  ;;  %v4068_v29 = vld [vmem:[%s5061_s2 + $0xa8] sm:$0xff] (%p834_p9) }
 0x15d   : >> { %v4187_v49 = vunpack.c.l.bf16 %v4227_v40  ;;  %v4188_v50 = vunpack.c.h.bf16 %v4227_v40  ;;  %v4191_v51 = vunpack.c.l.bf16 %v4228_v48  ;;  %v4192_v52 = vunpack.c.h.bf16 %v4228_v48  ;;  %v4070_v25 = vld [vmem:[%s5061_s2 + $0xb8] sm:$0xff] (%p834_p9)  ;;  %v4035_v31 = vld [vmem:[%s5061_s2 + $0x20] sm:$0xff] (%p834_p9)  ;;  %v4049_v33 = vld [vmem:[%s5061_s2 + $0x50] sm:$0xff] (%p834_p9) }
 0x15e   : >> { %v860_v53 = vmul.f32 %v4179_v4, %v859_v36  ;;  %v861_v54 = vmul.f32 %v4180_v42, %v859_v36  ;;  %v862_v30 = vmul.f32 %v4183_v43, %v859_v36  ;;  %v863_v63 = vmul.f32 %v4184_v47, %v859_v36  ;;  %1551 = vmatpush.bf16.msra.mxu2 (%p834_p9), %v4070_v25  ;;  %v4051_v32 = vld [vmem:[%s5061_s2 + $0x60] sm:$0xff] (%p834_p9)  ;;  %v4034_v35 = vld [vmem:[%s5061_s2 + $0x18] sm:$0xff] (%p834_p9)  ;;  %v4065_v40 = vld [vmem:[%s5061_s2 + $0x90] sm:$0xff] (%p834_p9) }
 0x15f   : >> { %v864_v0 = vmul.f32 %v4187_v49, %v859_v36  ;;  %v865_v1 = vmul.f32 %v4188_v50, %v859_v36  ;;  %v866_v7 = vmul.f32 %v4191_v51, %v859_v36  ;;  %v867_v2 = vmul.f32 %v4192_v52, %v859_v36  ;;  %1043 = vmatpush.bf16.msra.mxu0 (%p834_p9), %v4037_v26  ;;  %v4067_v34 = vld [vmem:[%s5061_s2 + $0xa0] sm:$0xff] (%p834_p9)  ;;  %v4050_v44 = vld [vmem:[%s5061_s2 + $0x58] sm:$0xff] (%p834_p9)  ;;  %v4032_v48 = vld [vmem:[%s5061_s2 + $0x8] sm:$0xff] (%p834_p9) }
 0x160   : >> { %v869_v57 = vadd.f32 %v868_v39, %v860_v53  ;;  %v870_v58 = vadd.f32 %v868_v39, %v861_v54  ;;  %v871_v5 = vadd.f32 %v868_v39, %v862_v30  ;;  %v872_v6 = vadd.f32 %v868_v39, %v863_v63  ;;  %4250 = vmatpush.bf16.msra.mxu3 (%p834_p9), %v4037_v26  ;;  %v4066_v36 = vld [vmem:[%s5061_s2 + $0x98] sm:$0xff] (%p834_p9)  ;;  %v4048_v49 = vld [vmem:[%s5061_s2 + $0x48] sm:$0xff] (%p834_p9)  ;;  %v4031_v63 = vld [vmem:[%s5061_s2] sm:$0xff] (%p834_p9) }
 0x161   : >> { %v873_v8 = vadd.f32 %v868_v39, %v864_v0  ;;  %v874_v9 = vadd.f32 %v868_v39, %v865_v1  ;;  %v875_v3 = vadd.f32 %v868_v39, %v866_v7  ;;  %v876_v10 = vadd.f32 %v868_v39, %v867_v2  ;;  %1314 = vmatpush.bf16.msra.mxu1 (%p834_p9), %v4053_v27  ;;  %v4033_v39 = vld [vmem:[%s5061_s2 + $0x10] sm:$0xff] (%p834_p9)  ;;  %v4064_v50 = vld [vmem:[%s5061_s2 + $0x88] sm:$0xff] (%p834_p9)  ;;  %v4047_v0 = vld [vmem:[%s5061_s2 + $0x40] sm:$0xff] (%p834_p9) }
 0x162   : >> { %vm877_vm11 = vcmp.ge.f32.partialorder %v869_v57, 0.0  ;;  %vm878_vm12 = vcmp.ge.f32.partialorder %v870_v58, 0.0  ;;  %v885_v11 = vmul.f32 0.01, %v869_v57  ;;  %v886_v12 = vmul.f32 0.01, %v870_v58  ;;  %1552 = vmatpush.bf16.msra.mxu2 (%p834_p9), %v4069_v28 }
 0x163   : >> { %vm879_vm13 = vcmp.ge.f32.partialorder %v871_v5, 0.0  ;;  %vm880_vm14 = vcmp.ge.f32.partialorder %v872_v6, 0.0  ;;  %v887_v38 = vmul.f32 0.01, %v871_v5  ;;  %v888_v13 = vmul.f32 0.01, %v872_v6  ;;  %1044 = vmatpush.bf16.msra.mxu0 (%p834_p9), %v4036_v61 }
 0x164   : >> { %v893_v14 = vsel %vm877_vm11, %v869_v57, %v885_v11  ;;  %v894_v15 = vsel %vm878_vm12, %v870_v58, %v886_v12  ;;  %vm881_vm15 = vcmp.ge.f32.partialorder %v873_v8, 0.0  ;;  %vm882_vm0 = vcmp.ge.f32.partialorder %v874_v9, 0.0  ;;  %4251 = vmatpush.bf16.msra.mxu3 (%p834_p9), %v4036_v61  ;;  %v4102_v2 = vld [vmem:[%s5061_s2 + $0x138] sm:$0xff] (%p834_p9)  ;;  %v4063_v57 = vld [vmem:[%s5061_s2 + $0x80] sm:$0xff] (%p834_p9)  ;;  %v4085_v12 = vld [vmem:[%s5061_s2 + $0xf0] sm:$0xff] (%p834_p9) }
 0x165   : >> { %v4196_v16 = vpack.c.bf16 %v894_v15, %v893_v14  ;;  %v895_v17 = vsel %vm879_vm13, %v871_v5, %v887_v38  ;;  %v896_v18 = vsel %vm880_vm14, %v872_v6, %v888_v13  ;;  %v889_v19 = vmul.f32 0.01, %v873_v8  ;;  %1315 = vmatpush.bf16.msra.mxu1 (%p834_p9), %v4052_v62  ;;  %v4086_v58 = vld [vmem:[%s5061_s2 + $0xf8] sm:$0xff] (%p834_p9)  ;;  %v4100_v13 = vld [vmem:[%s5061_s2 + $0x128] sm:$0xff] (%p834_p9)  ;;  %v4081_v27 = vld [vmem:[%s5061_s2 + $0xd0] sm:$0xff] (%p834_p9) }
 0x166   : >> { %v4201_v20 = vpack.c.bf16 %v896_v18, %v895_v17  ;;  %v890_v41 = vmul.f32 0.01, %v874_v9  ;;  %vm883_vm1 = vcmp.ge.f32.partialorder %v875_v3, 0.0  ;;  %vm884_vm2 = vcmp.ge.f32.partialorder %v876_v10, 0.0  ;;  %1553 = vmatpush.bf16.msra.mxu2 (%p834_p9), %v4068_v29  ;;  %v4084_v14 = vld [vmem:[%s5061_s2 + $0xe8] sm:$0xff] (%p834_p9)  ;;  %v4099_v18 = vld [vmem:[%s5061_s2 + $0x120] sm:$0xff] (%p834_p9) }
 0x167   : >> { %4197 = vst [vmem:[%s4638_s26] sm:$0xff] %v4196_v16   ;;  %v897_v21 = vsel %vm881_vm15, %v873_v8, %v889_v19  ;;  %v891_v22 = vmul.f32 0.01, %v875_v3  ;;  %v892_v55 = vmul.f32 0.01, %v876_v10  ;;  %1045 = vmatpush.bf16.msra.mxu0 (%p834_p9), %v4035_v31  ;;  %v4083_v19 = vld [vmem:[%s5061_s2 + $0xe0] sm:$0xff] (%p834_p9)  ;;  %vm2303_vm12 = vcmask (%p834_p9), 1042432  }
 0x168   : >> { %4229 = vst [vmem:[%s4638_s26 + $0x8] sm:$0xff] %v4201_v20   ;;  %v898_v56 = vsel %vm882_vm0, %v874_v9, %v890_v41  ;;  %4252 = vmatpush.bf16.msra.mxu3 (%p834_p9), %v4035_v31  ;;  %v4098_v31 = vld [vmem:[%s5061_s2 + $0x118] sm:$0xff] (%p834_p9)  ;;  %vm2304_vm13 = vsmask.f32 (%p834_p9), 2304 }
 0x169   : >> { %v4206_v23 = vpack.c.bf16 %v898_v56, %v897_v21  ;;  %v899_v24 = vsel %vm883_vm1, %v875_v3, %v891_v22  ;;  %v900_v45 = vsel %vm884_vm2, %v876_v10, %v892_v55  ;;  %836 = sbr.rel (!%p834_p9) target bundleno = 343 (0x157), region = 109  ;;  %1316 = vmatpush.bf16.msra.mxu1 (%p834_p9), %v4051_v32  ;;  %v4101_v10 = vld [vmem:[%s5061_s2 + $0x130] sm:$0xff] (%p834_p9) }
 0x16a   : >> { %v4211_v46 = vpack.c.bf16 %v900_v45, %v899_v24  ;;  %1554 = vmatpush.bf16.msra.mxu2 (%p834_p9), %v4067_v34  ;;  %v4080_v34 = vld [vmem:[%s5061_s2 + $0xc8] sm:$0xff] (%p834_p9) }
 0x16b   : >> { %4230 = vst [vmem:[%s4638_s26 + $0x10] sm:$0xff] %v4206_v23   ;;  %1046 = vmatpush.bf16.msra.mxu0 (%p834_p9), %v4034_v35  ;;  %v4082_v23 = vld [vmem:[%s5061_s2 + $0xd8] sm:$0xff] (%p834_p9) }
 0x16c   : >> { %4231 = vst [vmem:[%s4638_s26 + $0x18] sm:$0xff] %v4211_v46   ;;  %4253 = vmatpush.bf16.msra.mxu3 (%p834_p9), %v4034_v35  ;;  %v4097_v35 = vld [vmem:[%s5061_s2 + $0x110] sm:$0xff] (%p834_p9) }
 0x16d   : > { %1317 = vmatpush.bf16.msra.mxu1 (%p834_p9), %v4050_v44 }
 0x16e   : > { %1555 = vmatpush.bf16.msra.mxu2 %v4066_v36 }
 0x16f   : > { %1047 = vmatpush.bf16.msra.mxu0 %v4033_v39 }
 0x170   : > { %4254 = vmatpush.bf16.msra.mxu3 %v4033_v39 }
 0x171   : > { %1318 = vmatpush.bf16.msra.mxu1 %v4049_v33 }
 0x172   : > { %1556 = vmatpush.bf16.msra.mxu2 %v4065_v40 }
 0x173   : > { %v4039_v37 = vld [vmem:[#allocation2] sm:$0xff]  ;;  %v4040_v4 = vld [vmem:[#allocation2 + $0x8] sm:$0xff]  ;;  %1048 = vmatpush.bf16.msra.mxu0 %v4032_v48  ;;  %v4030_v9 = vld [vmem:[#allocation2 + $0x30] sm:$0xff] }
 0x174   : > { %v1197_v42 = vshll.u32 %v4039_v37, 16  ;;  %v3479_v43 = vld [vmem:[#allocation2] sm:$0xe]  ;;  %v4055_v47 = vld [vmem:[#allocation2] sm:$0xf0]  ;;  %v1195_v51 = vshrl.u32 %v4039_v37, 16  ;;  %4255 = vmatpush.bf16.msra.mxu3 %v4032_v48 }
 0x175   : > { %v1202_v53 = vshll.u32 %v4040_v4, 16  ;;  %v4717_v54 = vld [vmem:[#allocation2 + $0x8] sm:$0xff]  ;;  %v3480_v30 = vor.u32 %v4055_v47, %v3479_v43  ;;  %1319 = vmatpush.bf16.msra.mxu1 %v4048_v49  ;;  %v4024_v8 = vld [vmem:[#allocation2] sm:$0xff]  ;;  %v4041_v38 = vld [vmem:[#allocation2 + $0x10] sm:$0xff]  ;;  %v1206_v16 = vshrl.u32 %v4040_v4, 16 }
 0x176   : > { %v1199_v52 = vrot.slane %v1197_v42, 1  ;;  %1557 = vmatpush.bf16.msra.mxu2 %v4064_v50  ;;  %v1481_v6 = vrot.slane %v4717_v54, 1  ;;  %v931_v15 = vld [vmem:[#allocation2 + $0x38] sm:$0xf]  ;;  %v1210_v17 = vshll.u32 %v4041_v38, 16  ;;  %v4057_v20 = vld [vmem:[#allocation2 + $0x10] sm:$0xff] }
 0x177   : > { %v1204_v7 = vrot.slane %v1202_v53, 1  ;;  %v1480_v5 = vrot.slane %v3480_v30, 1  ;;  %1049 = vmatpush.bf16.msra.mxu0 %v4031_v63  ;;  %v977_v41 = vunpack.c.l.b16 %v931_v15  ;;  %v3559_v55 = vld [vmem:[#allocation2] sm:$0xe]  ;;  %v4071_v56 = vld [vmem:[#allocation2] sm:$0xf0] }
 0x178   : > { %v1200_v1 = vor.u32 %v1199_v52, %v1195_v51  ;;  %4256 = vmatpush.bf16.msra.mxu3 %v4031_v63  ;;  %v1212_v22 = vrot.slane %v1210_v17, 1  ;;  %v1483_v24 = vrot.slane %v4057_v20, 1  ;;  %v4025_v45 = vld [vmem:[#allocation2 + $0x8] sm:$0xff]  ;;  %v3560_v60 = vor.u32 %v4071_v56, %v3559_v55  ;;  %v4042_v32 = vld [vmem:[#allocation2 + $0x18] sm:$0xff]  ;;  %v4079_v4 = vld [vmem:[%s5061_s2 + $0xc0] sm:$0xff] }
 0x179   : > { %1320 = vmatpush.bf16.msra.mxu1 %v4047_v0  ;;  %v1482_v11 = vsel %vm1479_vm4, %v1480_v5, %v1481_v6  ;;  %v1208_v21 = vor.u32 %v1206_v16, %v1204_v7  ;;  %v985_v46 = vpack.c.b16 %v977_v41, %v977_v41  ;;  %v4072_v59 = vld [vmem:[#allocation2 + $0x8] sm:$0xff]  ;;  %v1214_v33 = vshrl.u32 %v4041_v38, 16  ;;  %v4058_v42 = vld [vmem:[#allocation2 + $0x18] sm:$0xff]  ;;  %v4026_v51 = vld [vmem:[#allocation2 + $0x10] sm:$0xff] }
 0x17a   : > { %v1205_v3 = vsel %vm1193_vm3, %v1200_v1, %v1204_v7  ;;  %1558 = vmatpush.bf16.msra.mxu2 %v4063_v57  ;;  %1050 = vmatmul.bf16.vlgmr.msra.gmra.mxu0 %v4024_v8  ;;  %v1484_v26 = vsel %vm1479_vm4, %v1481_v6, %v1483_v24  ;;  %v1719_v28 = vshrl.u32 %v3560_v60, 16  ;;  %v1722_v61 = vshll.u32 %v3560_v60, 16  ;;  %v4073_v53 = vld [vmem:[#allocation2 + $0x10] sm:$0xff]  ;;  %v4043_v1 = vld [vmem:[#allocation2 + $0x20] sm:$0xff]  ;;  %v4096_v7 = vld [vmem:[%s5061_s2 + $0x108] sm:$0xff] }
 0x17b   : > { %2083 = vmatpush.bf16.msrb.mxu0 %v4102_v2  ;;  %1080 = vmatmul.bf16.vlgmr.msra.gmra.mxu3 %v4030_v9  ;;  %v1213_v25 = vsel %vm1193_vm3, %v1208_v21, %v1212_v22  ;;  %v1727_v62 = vshrl.u32 %v4072_v59, 16  ;;  %v1730_v29 = vshll.u32 %v4072_v59, 16  ;;  %v1218_v40 = vshll.u32 %v4042_v32, 16  ;;  %v4059_v6 = vld [vmem:[#allocation2 + $0x20] sm:$0xff]  ;;  %v4074_v38 = vld [vmem:[#allocation2 + $0x18] sm:$0xff]  ;;  %v4044_v17 = vld [vmem:[#allocation2 + $0x28] sm:$0xff] }
 0x17c   : > { %1845 = vmatpush.bf16.msrb.mxu3 %v4086_v58  ;;  %1321 = vmatmul.bf16.vlgmr.msra.gmra.mxu1 %v1205_v3  ;;  %v1721_v44 = vrot.slane %v1719_v28, 1  ;;  %v1724_v36 = vrot.slane %v1722_v61, 2  ;;  %v1216_v48 = vor.u32 %v1214_v33, %v1212_v22  ;;  %v1485_v50 = vrot.slane %v4058_v42, 1  ;;  %v4060_v22 = vld [vmem:[#allocation2 + $0x28] sm:$0xff]  ;;  %v4075_v59 = vld [vmem:[#allocation2 + $0x20] sm:$0xff]  ;;  %v4045_v28 = vld [vmem:[#allocation2 + $0x30] sm:$0xff] }
 0x17d   : > { %1559 = vmatmul.bf16.vlgmr.msra.gmra.mxu2 %v1482_v11  ;;  %v1729_v37 = vrot.slane %v1727_v62, 1  ;;  %v1732_v39 = vrot.slane %v1730_v29, 2  ;;  %v1220_v49 = vrot.slane %v1218_v40, 1  ;;  %v1736_v63 = vshrl.u32 %v4073_v53, 16  ;;  %v4027_v11 = vld [vmem:[#allocation2 + $0x18] sm:$0xff]  ;;  %v4076_v33 = vld [vmem:[#allocation2 + $0x28] sm:$0xff] }
 0x17e   : > { %v1725_v43 = vor.u32 %v1724_v36, %v1721_v44  ;;  %v1486_v30 = vsel %vm1479_vm4, %v1483_v24, %v1485_v50  ;;  %v1739_v0 = vshll.u32 %v4073_v53, 16  ;;  %v1222_v58 = vshrl.u32 %v4042_v32, 16  ;;  %v4061_v32 = vld [vmem:[#allocation2 + $0x30] sm:$0xff]  ;;  %v3427_v42 = vld [vmem:[#allocation2 + $0x38] sm:$0xf] }
 0x17f   : > { %2084 = vmatpush.bf16.msrb.mxu0 %v4101_v10  ;;  %v1733_v47 = vor.u32 %v1732_v39, %v1729_v37  ;;  %v1221_v54 = vsel %vm1193_vm3, %v1216_v48, %v1220_v49  ;;  %v1738_v2 = vrot.slane %v1736_v63, 1  ;;  %v1226_v5 = vshll.u32 %v4043_v1, 16  ;;  %v4029_v37 = vld [vmem:[#allocation2 + $0x28] sm:$0xff]  ;;  %v4062_v53 = vld [vmem:[#allocation2 + $0x38] sm:$0x10] }
 0x180   : > { %1846 = vmatpush.bf16.msrb.mxu3 %v4085_v12  ;;  %v1741_v57 = vrot.slane %v1739_v0, 2  ;;  %v1224_v9 = vor.u32 %v1222_v58, %v1220_v49  ;;  %v1487_v10 = vrot.slane %v4059_v6, 1  ;;  %v1745_v15 = vshrl.u32 %v4074_v38, 16  ;;  %v4088_v63 = vld [vmem:[#allocation2 + $0x8] sm:$0xff] }
 0x181   : > { %v1734_v52 = vsel %vm1717_vm5, %v1725_v43, %v1733_v47  ;;  %v1228_v3 = vrot.slane %v1226_v5, 1  ;;  %v1748_v16 = vshll.u32 %v4074_v38, 16  ;;  %v1230_v41 = vshrl.u32 %v4043_v1, 16  ;;  %v4046_v43 = vld [vmem:[#allocation2 + $0x38] sm:$0x10] }
 0x182   : > { %v1742_v8 = vor.u32 %v1741_v57, %v1738_v2  ;;  %v1234_v21 = vshll.u32 %v4044_v17, 16  ;;  %v1489_v24 = vrot.slane %v4060_v22, 1  ;;  %v1238_v29 = vshrl.u32 %v4044_v17, 16  ;;  %v4089_v17 = vld [vmem:[#allocation2 + $0x10] sm:$0xff] }
 0x183   : > { %2085 = vmatpush.bf16.msrb.mxu0 %v4100_v13  ;;  %v1229_v13 = vsel %vm1193_vm3, %v1224_v9, %v1228_v3  ;;  %v1750_v20 = vrot.slane %v1748_v16, 2  ;;  %v1232_v56 = vor.u32 %v1230_v41, %v1228_v3  ;;  %v1491_v36 = vrot.slane %v4061_v32, 1  ;;  %v3587_v41 = vld [vmem:[#allocation2 + $0x38] sm:$0xf] }
 0x184   : > { %1847 = vmatpush.bf16.msrb.mxu3 %v4084_v14  ;;  %v1743_v12 = vsel %vm1717_vm5, %v1733_v47, %v1742_v8  ;;  %v1488_v14 = vsel %vm1479_vm4, %v1485_v50, %v1487_v10  ;;  %v1763_v47 = vshrl.u32 %v4076_v33, 16  ;;  %v1766_v48 = vshll.u32 %v4076_v33, 16  ;;  %v3639_v50 = vld [vmem:[#allocation2] sm:$0xc] }
 0x185   : > { %v3428_v49 = vor.u32 %v4046_v43, %v3427_v42  ;;  %v1246_v1 = vshrl.u32 %v4045_v28, 16  ;;  %v2013_v5 = vrot.slane %v4088_v63, 2 }
 0x187   : > { %2086 = vmatpush.bf16.msrb.mxu0 %v4099_v18  ;;  %v4095_v18 = vld [vmem:[%s5061_s2 + $0x100] sm:$0xff] }
 0x188   : > { %1848 = vmatpush.bf16.msrb.mxu3 %v4083_v19  ;;  %v1747_v19 = vrot.slane %v1745_v15, 1 }
 0x18a   : > { %1055 = vmatmul.bf16.gmra.mxu0 %v4025_v45  ;;  %v1751_v55 = vor.u32 %v1750_v20, %v1747_v19  ;;  %v4028_v45 = vld [vmem:[#allocation2 + $0x20] sm:$0xff]  ;;  %v2015_v20 = vrot.slane %v4089_v17, 2  ;;  %v4094_v17 = vld [vmem:[#allocation2 + $0x38] sm:$0x30] }
 0x18b   : > { %1085 = vmatmul.bf16.gmra.mxu3 %v985_v46  ;;  %2087 = vmatpush.bf16.msrb.mxu0 %v4098_v31  ;;  %v1242_v31 = vshll.u32 %v4045_v28, 16 }
 0x18c   : > { %1849 = vmatpush.bf16.msrb.mxu3 %v4082_v23  ;;  %1326 = vmatmul.bf16.gmra.mxu1 %v1213_v25  ;;  %v1236_v23 = vrot.slane %v1234_v21, 1  ;;  %v1752_v46 = vsel %vm1717_vm5, %v1742_v8, %v1751_v55  ;;  %v1490_v25 = vsel %vm1479_vm4, %v1487_v10, %v1489_v24  ;;  %v4078_v21 = vld [vmem:[#allocation2 + $0x38] sm:$0x30] }
 0x18d   : > { %1564 = vmatmul.bf16.gmra.mxu2 %v1484_v26  ;;  %v1754_v26 = vshrl.u32 %v4075_v59, 16  ;;  %v1244_v44 = vrot.slane %v1242_v31, 1 }
 0x18e   : > { %v1237_v60 = vsel %vm1193_vm3, %v1232_v56, %v1236_v23  ;;  %v2016_v56 = vsel %vm2011_vm6, %v2013_v5, %v2015_v20 }
 0x18f   : > { %2088 = vmatpush.bf16.msrb.mxu0 %v4097_v35  ;;  %v1756_v61 = vrot.slane %v1754_v26, 1  ;;  %v1240_v35 = vor.u32 %v1238_v29, %v1236_v23  ;;  %v1248_v6 = vor.u32 %v1246_v1, %v1244_v44  ;;  %v3588_v23 = vor.u32 %v4078_v21, %v3587_v41 }
 0x190   : > { %1850 = vmatpush.bf16.msrb.mxu3 %v4081_v27  ;;  %v1757_v27 = vshll.u32 %v4075_v59, 16 }
 0x191   : > { %v1245_v40 = vsel %vm1193_vm3, %v1240_v35, %v1244_v44  ;;  %v4091_v35 = vld [vmem:[#allocation2 + $0x20] sm:$0xff] }
 0x192   : > { %v1759_v62 = vrot.slane %v1757_v27, 2 }
 0x193   : > { %2089 = vmatpush.bf16.msrb.mxu0 %v4096_v7  ;;  %v1250_v7 = vshll.u32 %v3428_v49, 16 }
 0x194   : > { %1851 = vmatpush.bf16.msrb.mxu3 %v4080_v34  ;;  %v1760_v34 = vor.u32 %v1759_v62, %v1756_v61 }
 0x195   : > { %v1252_v8 = vrot.slane %v1250_v7, 1 }
 0x196   : > { %v1761_v39 = vsel %vm1717_vm5, %v1751_v55, %v1760_v34 }
 0x197   : > { %2090 = vmatpush.bf16.msrb.mxu0 %v4095_v18  ;;  %v1254_v18 = vshrl.u32 %v3428_v49, 16 }
 0x198   : > { %1852 = vmatpush.bf16.msrb.mxu3 %v4079_v4  ;;  %v1492_v4 = vsel %vm1479_vm4, %v1489_v24, %v1491_v36  ;;  %v1781_v24 = vshrl.u32 %v3588_v23, 16 }
 0x199   : > { %v1256_v22 = vor.u32 %v1254_v18, %v1252_v8 }
 0x19a   : > { %1060 = vmatmul.bf16.gmra.mxu0 %v4026_v51  ;;  %v4087_v51 = vld [vmem:[#allocation2] sm:$0xf0] }
 0x19b   : > { %1853 = vmatmul.bf16.vlgmr.msrb.gmra.mxu3 %v1734_v52  ;;  %v3507_v52 = vld [vmem:[#allocation2 + $0x38] sm:$0xf]  ;;  %v3640_v0 = vor.u32 %v4087_v51, %v3639_v50  ;;  %v4092_v50 = vld [vmem:[#allocation2 + $0x28] sm:$0xff] }
 0x19c   : > { %1331 = vmatmul.bf16.gmra.mxu1 %v1221_v54  ;;  %v1765_v54 = vrot.slane %v1763_v47, 1  ;;  %v3508_v2 = vor.u32 %v4062_v53, %v3507_v52  ;;  %v2021_v53 = vrot.slane %v4092_v50, 2 }
 0x19d   : > { %1569 = vmatmul.bf16.gmra.mxu2 %v1486_v30  ;;  %v1768_v30 = vrot.slane %v1766_v48, 2  ;;  %v2012_v58 = vrot.slane %v3640_v0, 2 }
 0x19e   : > { %v1493_v9 = vrot.slane %v3508_v2, 1 }
 0x19f   : > { %v1769_v57 = vor.u32 %v1768_v30, %v1765_v54  ;;  %v2014_v10 = vsel %vm2011_vm6, %v2012_v58, %v2013_v5  ;;  %v4093_v5 = vld [vmem:[#allocation2 + $0x30] sm:$0xff] }
 0x1a0   : > { %v1494_v38 = vsel %vm1479_vm4, %v1491_v36, %v1493_v9 }
 0x1a1   : > { %v1770_v3 = vsel %vm1717_vm5, %v1760_v34, %v1769_v57 }
 0x1aa   : > { %1065 = vmatmul.bf16.gmra.mxu0 %v4027_v11  ;;  %v4077_v11 = vld [vmem:[#allocation2 + $0x30] sm:$0xff] }
 0x1ab   : > { %1858 = vmatmul.bf16.gmra.mxu3 %v1743_v12  ;;  %v1253_v12 = vsel %vm1193_vm3, %v1248_v6, %v1252_v8 }
 0x1ac   : > { %1336 = vmatmul.bf16.gmra.mxu1 %v1229_v13  ;;  %v1772_v13 = vshrl.u32 %v4077_v11, 16 }
 0x1ad   : > { %1574 = vmatmul.bf16.gmra.mxu2 %v1488_v14  ;;  %v1775_v14 = vshll.u32 %v4077_v11, 16 }
 0x1ae   : > { %v1774_v15 = vrot.slane %v1772_v13, 1 }
 0x1af   : > { %v1777_v16 = vrot.slane %v1775_v14, 2 }
 0x1b1   : > { %v1778_v19 = vor.u32 %v1777_v16, %v1774_v15  ;;  %v3667_v16 = vld [vmem:[#allocation2 + $0x38] sm:$0xf] }
 0x1b2   : > { %v3668_v41 = vor.u32 %v4094_v17, %v3667_v16 }
 0x1b3   : > { %v1779_v55 = vsel %vm1717_vm5, %v1769_v57, %v1778_v19 }
 0x1ba   : > { %1070 = vmatmul.bf16.gmra.mxu0 %v4028_v45  ;;  %v1784_v45 = vshll.u32 %v3588_v23, 16 }
 0x1bb   : > { %1863 = vmatmul.bf16.gmra.mxu3 %v1752_v46  ;;  %v1783_v46 = vrot.slane %v1781_v24, 1 }
 0x1bc   : > { %1341 = vmatmul.bf16.gmra.mxu1 %v1237_v60  ;;  %v1786_v59 = vrot.slane %v1784_v45, 2  ;;  %v4090_v60 = vld [vmem:[#allocation2 + $0x18] sm:$0xff] }
 0x1bd   : > { %1579 = vmatmul.bf16.gmra.mxu2 %v1490_v25  ;;  %v2017_v26 = vrot.slane %v4090_v60, 2 }
 0x1be   : > { %v1787_v25 = vor.u32 %v1786_v59, %v1783_v46 }
 0x1bf   : > { %v2018_v61 = vsel %vm2011_vm6, %v2015_v20, %v2017_v26 }
 0x1c0   : > { %v1788_v28 = vsel %vm1717_vm5, %v1778_v19, %v1787_v25 }
 0x1ca   : > { %1075 = vmatmul.bf16.gmra.mxu0 %v4029_v37  ;;  %v2019_v37 = vrot.slane %v4091_v35, 2 }
 0x1cb   : > { %1868 = vmatmul.bf16.gmra.mxu3 %v1761_v39 }
 0x1cc   : > { %1346 = vmatmul.bf16.gmra.mxu1 %v1245_v40  ;;  %v2022_v0 = vsel %vm2011_vm6, %v2019_v37, %v2021_v53 }
 0x1cd   : > { %1584 = vmatmul.bf16.gmra.mxu2 %v1492_v4  ;;  %v2020_v4 = vsel %vm2011_vm6, %v2017_v26, %v2019_v37 }
 0x1da   : > { %2091 = vmatmul.bf16.vlgmr.msrb.gmra.mxu0 %v2014_v10 }
 0x1db   : > { %1873 = vmatmul.bf16.gmra.mxu3 %v1770_v3  ;;  %v2023_v3 = vrot.slane %v4093_v5, 2 }
 0x1dc   : > { %1351 = vmatmul.bf16.gmra.mxu1 %v1253_v12 }
 0x1dd   : > { %1589 = vmatmul.bf16.gmra.mxu2 %v1494_v38  ;;  %v2024_v38 = vsel %vm2011_vm6, %v2021_v53, %v2023_v3 }
 0x1ea   : > { %2096 = vmatmul.bf16.gmra.mxu0 %v2016_v56  ;;  %v2025_v56 = vrot.slane %v3668_v41, 2 }
 0x1eb   : > { %1878 = vmatmul.bf16.gmra.mxu3 %v1779_v55 }
 0x1ec   : > { %1356 = vmatmul.bf16.gmra.mxu1 %v1256_v22  ;;  %v2026_v46 = vsel %vm2011_vm6, %v2023_v3, %v2025_v56 }
 0x1ed   : > { %1594 = vmatmul.bf16.gmra.mxu2 %v1493_v9 }
 0x1f7   : > { %v1051_v27 = vpop.f32.mrf.mxu0 }
 0x1f9   : > { %v1322_v62 = vpop.f32.mrf.mxu1 }
 0x1fa   : > { %v1361_v29 = vadd.f32 %v1322_v62, %v1051_v27  ;;  %2101 = vmatmul.bf16.gmra.mxu0 %v2018_v61 }
 0x1fb   : > { %1883 = vmatmul.bf16.gmra.mxu3 %v1788_v28 }
 0x1fe   : > { %v4801_v31 = vpop.f32.mrf.mxu3 }
 0x1ff   : > { %v4803_v32 = vpop.f32.mrf.mxu0 }
 0x200   : > { %v1560_v34 = vpop.f32.mrf.mxu2 }
 0x201   : > { %v4805_v44 = vpop.f32.mrf.mxu1  ;;  %v4807_v36 = vadd.f32 %v1560_v34, %v1361_v29 }
 0x206   : > { %v4809_v39 = vpop.f32.mrf.mxu3 }
 0x207   : > { %v1056_v33 = vpop.f32.mrf.mxu0 }
 0x208   : > { %v4811_v40 = vpop.f32.mrf.mxu2 }
 0x209   : > { %v1327_v42 = vpop.f32.mrf.mxu1 }
 0x20a   : > { %v1363_v43 = vadd.f32 %v1327_v42, %v1056_v33  ;;  %2106 = vmatmul.bf16.gmra.mxu0 %v2020_v4 }
 0x20b   : > { %1888 = vmatmul.bf16.gmra.mxu3 %v1787_v25 }
 0x20e   : > { %v1086_v47 = vpop.f32.mrf.mxu3 }
 0x20f   : > { %v4814_v48 = vpop.f32.mrf.mxu0 }
 0x210   : > { %v1565_v49 = vpop.f32.mrf.mxu2 }
 0x211   : > { %v4816_v51 = vpop.f32.mrf.mxu1  ;;  %v4818_v52 = vadd.f32 %v1565_v49, %v1363_v43 }
 0x216   : > { %v1088_v54 = vpop.f32.mrf.mxu3 }
 0x217   : > { %v1061_v30 = vpop.f32.mrf.mxu0 }
 0x218   : > { %v4820_v63 = vpop.f32.mrf.mxu2 }
 0x219   : > { %v1332_v1 = vpop.f32.mrf.mxu1 }
 0x21a   : > { %v1365_v7 = vadd.f32 %v1332_v1, %v1061_v30  ;;  %2111 = vmatmul.bf16.gmra.mxu0 %v2022_v0 }
 0x21e   : > { %v1854_v2 = vpop.f32.mrf.mxu3 }
 0x21f   : > { %v1063_v57 = vpop.f32.mrf.mxu0  ;;  %v1893_v0 = vadd.f32 %v1854_v2, %v4807_v36 }
 0x220   : > { %v1570_v58 = vpop.f32.mrf.mxu2 }
 0x221   : > { %v1334_v6 = vpop.f32.mrf.mxu1  ;;  %v4823_v8 = vadd.f32 %v1570_v58, %v1365_v7 }
 0x222   : > { %v1366_v9 = vadd.f32 %v1334_v6, %v1063_v57  ;;  %v1362_v6 = vadd.f32 %v4805_v44, %v4803_v32 }
 0x226   : > { %v1856_v10 = vpop.f32.mrf.mxu3 }
 0x227   : > { %v1066_v11 = vpop.f32.mrf.mxu0 }
 0x228   : > { %v1572_v12 = vpop.f32.mrf.mxu2 }
 0x229   : > { %v1337_v13 = vpop.f32.mrf.mxu1  ;;  %v4826_v14 = vadd.f32 %v1572_v12, %v1366_v9  ;;  %v1600_v9 = vadd.f32 %v4811_v40, %v1362_v6 }
 0x22a   : > { %v1367_v15 = vadd.f32 %v1337_v13, %v1066_v11  ;;  %2116 = vmatmul.bf16.gmra.mxu0 %v2024_v38 }
 0x22b   : > { %v1894_v11 = vadd.f32 %v1856_v10, %v1600_v9 }
 0x22e   : > { %v1859_v18 = vpop.f32.mrf.mxu3 }
 0x22f   : > { %v1068_v19 = vpop.f32.mrf.mxu0  ;;  %v1895_v17 = vadd.f32 %v1859_v18, %v4818_v52 }
 0x230   : > { %v1575_v20 = vpop.f32.mrf.mxu2 }
 0x231   : > { %v1339_v21 = vpop.f32.mrf.mxu1  ;;  %v4828_v22 = vadd.f32 %v1575_v20, %v1367_v15 }
 0x232   : > { %v1368_v55 = vadd.f32 %v1339_v21, %v1068_v19 }
 0x236   : > { %v1861_v23 = vpop.f32.mrf.mxu3 }
 0x237   : > { %v1071_v24 = vpop.f32.mrf.mxu0 }
 0x238   : > { %v1577_v45 = vpop.f32.mrf.mxu2 }
 0x239   : > { %v1342_v59 = vpop.f32.mrf.mxu1  ;;  %v4831_v60 = vadd.f32 %v1577_v45, %v1368_v55 }
 0x23a   : > { %v1369_v25 = vadd.f32 %v1342_v59, %v1071_v24  ;;  %2121 = vmatmul.bf16.gmra.mxu0 %v2026_v46 }
 0x23e   : > { %v1864_v26 = vpop.f32.mrf.mxu3 }
 0x23f   : > { %v1073_v27 = vpop.f32.mrf.mxu0  ;;  %v1897_v18 = vadd.f32 %v1864_v26, %v4823_v8  ;;  %v4112_v8 = vld [vmem:[%s5062_s3 + $0x38] sm:$0xff] }
 0x240   : > { %v1580_v28 = vpop.f32.mrf.mxu2  ;;  %v4123_v26 = vld [vmem:[%s5062_s3 + $0x78] sm:$0xff]  ;;  %2394 = vmatpush.bf16.msrb.mxu1 %v4112_v8 }
 0x241   : > { %v1344_v61 = vpop.f32.mrf.mxu1  ;;  %v4833_v62 = vadd.f32 %v1580_v28, %v1369_v25  ;;  %2539 = vmatpush.bf16.msrb.mxu2 %v4123_v26 }
 0x242   : > { %v1370_v29 = vadd.f32 %v1344_v61, %v1073_v27 }
 0x246   : > { %v1866_v34 = vpop.f32.mrf.mxu3 }
 0x247   : > { %v1076_v35 = vpop.f32.mrf.mxu0 }
 0x248   : > { %v1582_v37 = vpop.f32.mrf.mxu2 }
 0x249   : > { %v1347_v33 = vpop.f32.mrf.mxu1  ;;  %v4835_v4 = vadd.f32 %v1582_v37, %v1370_v29 }
 0x24a   : > { %v1371_v42 = vadd.f32 %v1347_v33, %v1076_v35  ;;  %2126 = vmatmul.bf16.gmra.mxu0 %v2025_v56 }
 0x24e   : > { %v1869_v43 = vpop.f32.mrf.mxu3 }
 0x24f   : > { %v1078_v47 = vpop.f32.mrf.mxu0 }
 0x250   : > { %v1585_v49 = vpop.f32.mrf.mxu2 }
 0x251   : > { %v1349_v50 = vpop.f32.mrf.mxu1  ;;  %v4837_v53 = vadd.f32 %v1585_v49, %v1371_v42 }
 0x252   : > { %v1372_v54 = vadd.f32 %v1349_v50, %v1078_v47 }
 0x256   : > { %v1871_v30 = vpop.f32.mrf.mxu3 }
 0x257   : > { %v2092_v1 = vpop.f32.mrf.mxu0 }
 0x258   : > { %v1587_v7 = vpop.f32.mrf.mxu2  ;;  %v2131_v58 = vadd.f32 %v2092_v1, %v1893_v0 }
 0x259   : > { %v1352_v57 = vpop.f32.mrf.mxu1  ;;  %v4840_v5 = vadd.f32 %v1587_v7, %v1372_v54  ;;  %v4111_v54 = vld [vmem:[%s5062_s3 + $0x30] sm:$0xff] }
 0x25a   : > { %2146 = vst [vmem:[#allocation4] sm:$0xff] %v2131_v58  ;;  %v1373_v12 = vadd.f32 %v1352_v57, %v4801_v31  ;;  %v1364_v31 = vadd.f32 %v4816_v51, %v4814_v48  ;;  %v1898_v48 = vadd.f32 %v1866_v34, %v4826_v14  ;;  %v1900_v34 = vadd.f32 %v1871_v30, %v4831_v60  ;;  %v4122_v60 = vld [vmem:[%s5062_s3 + $0x70] sm:$0xff] }
 0x25b   : > { %2395 = vmatpush.bf16.msrb.mxu1 %v4111_v54  ;;  %2540 = vmatpush.bf16.msrb.mxu2 %v4122_v60 }
 0x25c   : > { %v1602_v10 = vadd.f32 %v4820_v63, %v1364_v31 }
 0x25e   : > { %v1874_v3 = vpop.f32.mrf.mxu3  ;;  %v1896_v55 = vadd.f32 %v1861_v23, %v1602_v10  ;;  %v1899_v23 = vadd.f32 %v1869_v43, %v4828_v22 }
 0x25f   : > { %v2094_v38 = vpop.f32.mrf.mxu0  ;;  %v1901_v33 = vadd.f32 %v1874_v3, %v4833_v62 }
 0x260   : > { %v1590_v13 = vpop.f32.mrf.mxu2  ;;  %v2132_v36 = vadd.f32 %v2094_v38, %v1894_v11 }
 0x261   : > { %v1354_v15 = vpop.f32.mrf.mxu1  ;;  %v4846_v2 = vadd.f32 %v1590_v13, %v1373_v12 }
 0x262   : > { %2147 = vst [vmem:[#allocation4 + $0x8] sm:$0xff] %v2132_v36  ;;  %v1374_v19 = vadd.f32 %v1354_v15, %v4809_v39 }
 0x266   : > { %v1876_v16 = vpop.f32.mrf.mxu3 }
 0x267   : > { %v2097_v32 = vpop.f32.mrf.mxu0  ;;  %v1902_v47 = vadd.f32 %v1876_v16, %v4835_v4 }
 0x268   : > { %v1592_v44 = vpop.f32.mrf.mxu2  ;;  %v2133_v40 = vadd.f32 %v2097_v32, %v1895_v17 }
 0x269   : > { %v1357_v20 = vpop.f32.mrf.mxu1  ;;  %v4850_v41 = vadd.f32 %v1592_v44, %v1374_v19 }
 0x26a   : > { %2148 = vst [vmem:[#allocation4 + $0x10] sm:$0xff] %v2133_v40  ;;  %v4374_v40 = vmov 37.0  }
 0x26b   : > { %4317 = vrcp.f32 %v4374_v40  ;;  %v4131_v40 = vld [vmem:[%s5062_s3 + $0xa0] sm:$0xff] }
 0x26e   : > { %v1879_v21 = vpop.f32.mrf.mxu3 }
 0x26f   : > { %v2099_v56 = vpop.f32.mrf.mxu0  ;;  %v1903_v62 = vadd.f32 %v1879_v21, %v4837_v53 }
 0x270   : > { %v1595_v24 = vpop.f32.mrf.mxu2  ;;  %v2134_v45 = vadd.f32 %v2099_v56, %v1896_v55 }
 0x271   : > { %v1359_v52 = vpop.f32.mrf.mxu1  ;;  %v2161_v11 = vld [vmem:[#allocation4] ss:$3 sm:$0xff]  ;;  %v2171_v12 = vld [vmem:[#allocation4 + $0x1] ss:$3 sm:$0xff]  ;;  %v2186_v31 = vld [vmem:[#allocation4 + $0x2] ss:$3 sm:$0xff] }
 0x272   : > { %2149 = vst [vmem:[#allocation4 + $0x18] sm:$0xff] %v2134_v45  ;;  %v2180_v19 = vmax.f32 %v2161_v11, %v2171_v12  ;;  %v4134_v12 = vld [vmem:[%s5062_s3 + $0xb8] sm:$0xff] }
 0x273   : > { %2671 = vmatpush.bf16.msra.mxu3 %v4134_v12 }
 0x274   : > { %v2195_v21 = vmax.f32 %v2180_v19, %v2186_v31  ;;  %v4132_v19 = vld [vmem:[%s5062_s3 + $0xa8] sm:$0xff] }
 0x276   : > { %v1881_v39 = vpop.f32.mrf.mxu3 }
 0x277   : > { %v2102_v46 = vpop.f32.mrf.mxu0  ;;  %v1904_v4 = vadd.f32 %v1881_v39, %v4840_v5  ;;  %v4318_v39 = vpop.eup %4317 }
 0x278   : > { %v1597_v59 = vpop.f32.mrf.mxu2  ;;  %v2135_v25 = vadd.f32 %v2102_v46, %v1897_v18  ;;  %vm2224_vm8 = vweird.f32 %v4318_v39 }
 0x27a   : > { %2150 = vst [vmem:[#allocation4 + $0x20] sm:$0xff] %v2135_v25 }
 0x27e   : > { %v1884_v27 = vpop.f32.mrf.mxu3 }
 0x27f   : > { %v2104_v51 = vpop.f32.mrf.mxu0  ;;  %v1905_v57 = vadd.f32 %v1884_v27, %v4846_v2 }
 0x280   : > { %v2136_v28 = vadd.f32 %v2104_v51, %v1898_v48 }
 0x282   : > { %2151 = vst [vmem:[#allocation4 + $0x28] sm:$0xff] %v2136_v28 }
 0x286   : > { %v1886_v63 = vpop.f32.mrf.mxu3 }
 0x287   : > { %v2107_v61 = vpop.f32.mrf.mxu0  ;;  %v1906_v38 = vadd.f32 %v1886_v63, %v4850_v41  ;;  %v4311_v41 = vld [vmem:[%s5063_s4 + $0x2] ss:$0 sm:$0xff] }
 0x288   : > { %v2137_v29 = vadd.f32 %v2107_v61, %v1899_v23  ;;  %v2202_v18 = vadd.f32 %v4311_v41, %v2195_v21  ;;  %v2220_v23 = vmul.f32 37.0, %v4318_v39  ;;  %v4107_v21 = vld [vmem:[%s5062_s3 + $0x10] sm:$0xff] }
 0x289   : > { %v2163_v9 = vld [vmem:[#allocation4 + $0x18] ss:$3 sm:$0xff]  ;;  %v2173_v3 = vld [vmem:[#allocation4 + $0x19] ss:$3 sm:$0xff]  ;;  %v2188_v44 = vld [vmem:[#allocation4 + $0x1a] ss:$3 sm:$0xff] }
 0x28a   : > { %2152 = vst [vmem:[#allocation4 + $0x30] sm:$0xff] %v2137_v29  ;;  %v2181_v15 = vmax.f32 %v2163_v9, %v2173_v3 }
 0x28c   : > { %v2196_v2 = vmax.f32 %v2181_v15, %v2188_v44  ;;  %v4110_v15 = vld [vmem:[%s5062_s3 + $0x28] sm:$0xff] }
 0x28d   : > { %2396 = vmatpush.bf16.msrb.mxu1 %v4110_v15  ;;  %v4142_v15 = vld [vmem:[%s5062_s3 + $0xe0] sm:$0xff] }
 0x28e   : > { %v1889_v14 = vpop.f32.mrf.mxu3  ;;  %v2203_v24 = vadd.f32 %v4311_v41, %v2196_v2  ;;  %v4121_v2 = vld [vmem:[%s5062_s3 + $0x68] sm:$0xff] }
 0x28f   : > { %v2109_v35 = vpop.f32.mrf.mxu0  ;;  %2541 = vmatpush.bf16.msrb.mxu2 %v4121_v2  ;;  %v4153_v2 = vld [vmem:[%s5062_s3 + $0x120] sm:$0xff] }
 0x290   : > { %v2138_v37 = vadd.f32 %v2109_v35, %v1900_v34  ;;  %v2207_v48 = vadd.f32 %v2203_v24, %v2202_v18  ;;  %v2221_v34 = vsub.f32 1.0, %v2220_v23  ;;  %v4145_v23 = vld [vmem:[%s5062_s3 + $0xf8] sm:$0xff] }
 0x292   : > { %2153 = vst [vmem:[#allocation4 + $0x38] sm:$0xff] %v2138_v37 }
 0x296   : > { %v1891_v22 = vpop.f32.mrf.mxu3 }
 0x297   : > { %v2112_v42 = vpop.f32.mrf.mxu0  ;;  %v2222_v22 = vmul.f32 %v4318_v39, %v2221_v34  ;;  %v4312_v34 = vld [vmem:[%s5063_s4 + $0x3] ss:$0 sm:$0xff] }
 0x298   : > { %v2139_v43 = vadd.f32 %v2112_v42, %v1901_v33 }
 0x29a   : > { %2154 = vst [vmem:[#allocation4 + $0x40] sm:$0xff] %v2139_v43  ;;  %v2223_v43 = vadd.f32 %v4318_v39, %v2222_v22  ;;  %v4143_v22 = vld [vmem:[%s5062_s3 + $0xe8] sm:$0xff] }
 0x29f   : > { %v2114_v49 = vpop.f32.mrf.mxu0 }
 0x2a0   : > { %v2140_v50 = vadd.f32 %v2114_v49, %v1902_v47 }
 0x2a1   : > { %v2165_v53 = vld [vmem:[#allocation4 + $0x30] ss:$3 sm:$0xff]  ;;  %v2175_v13 = vld [vmem:[#allocation4 + $0x31] ss:$3 sm:$0xff]  ;;  %v2190_v10 = vld [vmem:[#allocation4 + $0x32] ss:$3 sm:$0xff] }
 0x2a2   : > { %2155 = vst [vmem:[#allocation4 + $0x48] sm:$0xff] %v2140_v50  ;;  %v2182_v32 = vmax.f32 %v2165_v53, %v2175_v13  ;;  %v2225_v50 = vsel %vm2224_vm8, %v4318_v39, %v2223_v43 }
 0x2a4   : > { %v2197_v55 = vmax.f32 %v2182_v32, %v2190_v10  ;;  %v4120_v10 = vld [vmem:[%s5062_s3 + $0x60] sm:$0xff] }
 0x2a5   : > { %2542 = vmatpush.bf16.msrb.mxu2 %v4120_v10 }
 0x2a6   : > { %v2204_v46 = vadd.f32 %v4311_v41, %v2197_v55  ;;  %v4130_v55 = vld [vmem:[%s5062_s3 + $0x98] sm:$0xff] }
 0x2a7   : > { %v2117_v30 = vpop.f32.mrf.mxu0 }
 0x2a8   : > { %v2141_v0 = vadd.f32 %v2117_v30, %v1903_v62  ;;  %v2208_v61 = vadd.f32 %v2207_v48, %v2204_v46  ;;  %v4127_v48 = vld [vmem:[%s5062_s3 + $0x80] sm:$0xff] }
 0x2aa   : > { %2156 = vst [vmem:[#allocation4 + $0x50] sm:$0xff] %v2141_v0 }
 0x2af   : > { %v2119_v1 = vpop.f32.mrf.mxu0 }
 0x2b0   : > { %v2142_v7 = vadd.f32 %v2119_v1, %v1904_v4 }
 0x2b2   : > { %2157 = vst [vmem:[#allocation4 + $0x58] sm:$0xff] %v2142_v7 }
 0x2b7   : > { %v2122_v58 = vpop.f32.mrf.mxu0 }
 0x2b8   : > { %v2143_v6 = vadd.f32 %v2122_v58, %v1905_v57 }
 0x2b9   : > { %v2167_v16 = vld [vmem:[#allocation4 + $0x48] ss:$3 sm:$0xff]  ;;  %v2177_v5 = vld [vmem:[#allocation4 + $0x49] ss:$3 sm:$0xff]  ;;  %v2192_v56 = vld [vmem:[#allocation4 + $0x4a] ss:$3 sm:$0xff] }
 0x2ba   : > { %2158 = vst [vmem:[#allocation4 + $0x60] sm:$0xff] %v2143_v6  ;;  %v2183_v20 = vmax.f32 %v2167_v16, %v2177_v5 }
 0x2bc   : > { %v2198_v45 = vmax.f32 %v2183_v20, %v2192_v56  ;;  %v4108_v20 = vld [vmem:[%s5062_s3 + $0x18] sm:$0xff] }
 0x2be   : > { %v2205_v51 = vadd.f32 %v4311_v41, %v2198_v45  ;;  %v4106_v45 = vld [vmem:[%s5062_s3 + $0x8] sm:$0xff] }
 0x2bf   : > { %v2124_v36 = vpop.f32.mrf.mxu0 }
 0x2c0   : > { %v2144_v17 = vadd.f32 %v2124_v36, %v1906_v38  ;;  %v2209_v8 = vadd.f32 %v2208_v61, %v2205_v51  ;;  %v4133_v36 = vld [vmem:[%s5062_s3 + $0xb0] sm:$0xff] }
 0x2c1   : > { %2672 = vmatpush.bf16.msra.mxu3 %v4133_v36 }
 0x2c2   : > { %2159 = vst [vmem:[#allocation4 + $0x68] sm:$0xff] %v2144_v17  ;;  %v4109_v17 = vld [vmem:[%s5062_s3 + $0x20] sm:$0xff] }
 0x2c3   : > { %2397 = vmatpush.bf16.msrb.mxu1 %v4109_v17 }
 0x2c5   : > { %2673 = vmatpush.bf16.msra.mxu3 %v4132_v19 }
 0x2c7   : > { %v2127_v52 = vpop.f32.mrf.mxu0  ;;  %2398 = vmatpush.bf16.msrb.mxu1 %v4108_v20  ;;  %v4141_v20 = vld [vmem:[%s5062_s3 + $0xd8] sm:$0xff] }
 0x2c8   : > { %v4129_v52 = vld [vmem:[%s5062_s3 + $0x90] sm:$0xff] }
 0x2c9   : > { %v2169_v59 = vld [vmem:[#allocation4 + $0x60] ss:$3 sm:$0x1f]  ;;  %v2179_v25 = vld [vmem:[#allocation4 + $0x61] ss:$3 sm:$0x1f]  ;;  %2674 = vmatpush.bf16.msra.mxu3 %v4131_v40 }
 0x2ca   : > { %v2184_v27 = vmax.f32 %v2169_v59, %v2179_v25  ;;  %v2194_v28 = vld [vmem:[#allocation4 + $0x62] ss:$3 sm:$0x1f] }
 0x2cb   : > { %2399 = vmatpush.bf16.msrb.mxu1 %v4107_v21  ;;  %v4128_v59 = vld [vmem:[%s5062_s3 + $0x88] sm:$0xff] }
 0x2cc   : > { %v2199_v63 = vmax.f32 %v2184_v27, %v2194_v28  ;;  %v4117_v25 = vld [vmem:[%s5062_s3 + $0x48] sm:$0xff]  ;;  %v4116_v28 = vld [vmem:[%s5062_s3 + $0x40] sm:$0xff] }
 0x2cd   : > { %2675 = vmatpush.bf16.msra.mxu3 %v4130_v55 }
 0x2ce   : > { %v2206_v29 = vadd.f32 %v4311_v41, %v2199_v63 }
 0x2cf   : > { %v2129_v26 = vpop.f32.mrf.mxu0  ;;  %2400 = vmatpush.bf16.msrb.mxu1 %v4106_v45 }
 0x2d0   : > { %v2211_v14 = vsel %vm2210_vm7, %v2206_v29, 0.0  ;;  %v4144_v26 = vld [vmem:[%s5062_s3 + $0xf0] sm:$0xff] }
 0x2d1   : > { %v2212_v35 = vadd.f32 %v2211_v14, %v2209_v8  ;;  %2676 = vmatpush.bf16.msra.mxu3 %v4129_v52  ;;  %v4156_v8 = vld [vmem:[%s5062_s3 + $0x138] sm:$0xff]  ;;  %v4140_v52 = vld [vmem:[%s5062_s3 + $0xd0] sm:$0xff] }
 0x2d3   : > { %v2213_v37 = vrot.slane %v2212_v35, 4 }
 0x2d5   : > { %v2214_v33 = vadd.f32 %v2213_v37, %v2212_v35  ;;  %2677 = vmatpush.bf16.msra.mxu3 %v4128_v59  ;;  %v4155_v35 = vld [vmem:[%s5062_s3 + $0x130] sm:$0xff] }
 0x2d7   : > { %v2215_v42 = vrot.slane %v2214_v33, 2 }
 0x2d9   : > { %v2216_v47 = vadd.f32 %v2215_v42, %v2214_v33  ;;  %2678 = vmatpush.bf16.msra.mxu3 %v4127_v48  ;;  %v4313_v42 = vld [vmem:[%s5063_s4 + $0x4] ss:$0 sm:$0xff] }
 0x2db   : > { %v2217_v49 = vrot.slane %v2216_v47, 1 }
 0x2dd   : > { %v2218_v54 = vadd.f32 %v2217_v49, %v2216_v47 }
 0x2df   : > { %v2226_v60 = vmul.f32 %v2225_v50, %v2218_v54 }
 0x2e1   : > { %v4881_v62 = vsub.f32 %v2202_v18, %v2226_v60  ;;  %v4883_v30 = vsub.f32 %v2203_v24, %v2226_v60  ;;  %v4885_v0 = vsub.f32 %v2204_v46, %v2226_v60  ;;  %v4887_v4 = vsub.f32 %v2206_v29, %v2226_v60  ;;  %v4119_v24 = vld [vmem:[%s5062_s3 + $0x58] sm:$0xff]  ;;  %v4118_v18 = vld [vmem:[%s5062_s3 + $0x50] sm:$0xff]  ;;  %v4105_v46 = vld [vmem:[%s5062_s3] sm:$0xff] }
 0x2e2   : > { %v4889_v1 = vsub.f32 %v2205_v51, %v2226_v60  ;;  %2543 = vmatpush.bf16.msrb.mxu2 %v4119_v24  ;;  %2401 = vmatpush.bf16.msrb.mxu1 %v4105_v46 }
 0x2e3   : > { %v2232_v7 = vmul.f32 %v4881_v62, %v4881_v62  ;;  %v2233_v57 = vmul.f32 %v4883_v30, %v4883_v30  ;;  %v2234_v58 = vmul.f32 %v4885_v0, %v4885_v0  ;;  %v2236_v9 = vmul.f32 %v4887_v4, %v4887_v4 }
 0x2e4   : > { %v2235_v3 = vmul.f32 %v4889_v1, %v4889_v1 }
 0x2e5   : > { %v2237_v6 = vadd.f32 %v2233_v57, %v2232_v7  ;;  %v2240_v53 = vsel %vm2210_vm7, %v2236_v9, 0.0  ;;  %vm2305_vm7 = vmand %vm2303_vm12, %vm2304_vm13 }
 0x2e6   : > { %2544 = vmatpush.bf16.msrb.mxu2 %v4118_v18  ;;  %2824 = vmatpush.bf16.msra.mxu1 %v4145_v23 }
 0x2e7   : > { %v2238_v11 = vadd.f32 %v2237_v6, %v2234_v58 }
 0x2e9   : > { %v2239_v38 = vadd.f32 %v2238_v11, %v2235_v3 }
 0x2ea   : > { %2545 = vmatpush.bf16.msrb.mxu2 %v4117_v25  ;;  %2825 = vmatpush.bf16.msra.mxu1 %v4144_v26 }
 0x2eb   : > { %v2241_v13 = vadd.f32 %v2240_v53, %v2239_v38 }
 0x2ed   : > { %v2242_v16 = vrot.slane %v2241_v13, 4 }
 0x2ee   : > { %2546 = vmatpush.bf16.msrb.mxu2 %v4116_v28  ;;  %2826 = vmatpush.bf16.msra.mxu1 %v4143_v22 }
 0x2ef   : > { %v2243_v5 = vadd.f32 %v2242_v16, %v2241_v13  ;;  %v4154_v13 = vld [vmem:[%s5062_s3 + $0x128] sm:$0xff] }
 0x2f1   : > { %v2244_v32 = vrot.slane %v2243_v5, 2 }
 0x2f2   : > { %2956 = vmatpush.bf16.msra.mxu2 %v4156_v8  ;;  %2827 = vmatpush.bf16.msra.mxu1 %v4142_v15  ;;  %v4115_v8 = vld [vmem:[#allocation3 + $0x8] sm:$0x10] }
 0x2f3   : > { %v2245_v44 = vadd.f32 %v2244_v32, %v2243_v5  ;;  %v2306_v32 = vld [vmem:[#allocation3 + $0x8] sm:$0x7] }
 0x2f5   : > { %v2246_v31 = vrot.slane %v2245_v44, 1 }
 0x2f6   : > { %2957 = vmatpush.bf16.msra.mxu2 %v4155_v35  ;;  %2828 = vmatpush.bf16.msra.mxu1 %v4141_v20  ;;  %v4138_v35 = vld [vmem:[%s5062_s3 + $0xc0] sm:$0xff] }
 0x2f7   : > { %v2247_v41 = vadd.f32 %v2246_v31, %v2245_v44  ;;  %v4152_v31 = vld [vmem:[%s5062_s3 + $0x118] sm:$0xff] }
 0x2f9   : > { %v2248_v56 = vmul.f32 %v2247_v41, %v2225_v50 }
 0x2fa   : > { %2958 = vmatpush.bf16.msra.mxu2 %v4154_v13  ;;  %2829 = vmatpush.bf16.msra.mxu1 %v4140_v52 }
 0x2fb   : > { %v2249_v39 = vadd.f32 1e-05, %v2248_v56 }
 0x2fd   : > { %4319 = vrsqrt.f32 %v2249_v39  ;;  %vm2256_vm10 = vweird.f32 %v2249_v39 }
 0x2fe   : > { %2959 = vmatpush.bf16.msra.mxu2 %v4153_v2 }
 0x302   : > { %2960 = vmatpush.bf16.msra.mxu2 %v4152_v31 }
 0x303   : > { %v4320_v27 = vpop.eup %4319 }
 0x304   : > { %v2251_v51 = vmul.f32 %v4320_v27, %v2249_v39  ;;  %vm2257_vm9 = vweird.f32 %v4320_v27 }
 0x305   : > { %vm2258_vm11 = vmor %vm2256_vm10, %vm2257_vm9 }
 0x306   : > { %v2252_v63 = vmul.f32 %v4320_v27, %v2251_v51  ;;  %v4151_v51 = vld [vmem:[%s5062_s3 + $0x110] sm:$0xff] }
 0x307   : > { %2961 = vmatpush.bf16.msra.mxu2 %v4151_v51 }
 0x308   : > { %v2253_v61 = vmul.f32 0.5, %v2252_v63 }
 0x30a   : > { %v2254_v29 = vsub.f32 1.5, %v2253_v61 }
 0x30c   : > { %v2255_v14 = vmul.f32 %v4320_v27, %v2254_v29  ;;  %v4126_v29 = vld [vmem:[#allocation3 + $0x8] sm:$0x10] }
 0x30e   : > { %v2259_v37 = vsel %vm2258_vm11, %v4320_v27, %v2255_v14  ;;  %v4139_v14 = vld [vmem:[%s5062_s3 + $0xc8] sm:$0xff] }
 0x30f   : > { %v2264_v33 = vmul.f32 %v2259_v37, %v4887_v4  ;;  %v2260_v43 = vmul.f32 %v2259_v37, %v4881_v62  ;;  %v2261_v47 = vmul.f32 %v2259_v37, %v4883_v30  ;;  %v2262_v49 = vmul.f32 %v2259_v37, %v4885_v0  ;;  %2830 = vmatpush.bf16.msra.mxu1 %v4139_v14 }
 0x310   : > { %v2263_v50 = vmul.f32 %v2259_v37, %v4889_v1 }
 0x311   : > { %v2271_v54 = vmul.f32 %v4312_v34, %v2264_v33  ;;  %v2267_v60 = vmul.f32 %v4312_v34, %v2260_v43  ;;  %v2268_v7 = vmul.f32 %v4312_v34, %v2261_v47  ;;  %v2269_v57 = vmul.f32 %v4312_v34, %v2262_v49  ;;  %v4149_v47 = vld [vmem:[%s5062_s3 + $0x100] sm:$0xff] }
 0x312   : > { %v2270_v58 = vmul.f32 %v4312_v34, %v2263_v50  ;;  %v4150_v34 = vld [vmem:[%s5062_s3 + $0x108] sm:$0xff] }
 0x313   : > { %v2278_v4 = vadd.f32 %v4313_v42, %v2271_v54  ;;  %v2274_v6 = vadd.f32 %v4313_v42, %v2267_v60  ;;  %v2275_v9 = vadd.f32 %v4313_v42, %v2268_v7  ;;  %v2276_v3 = vadd.f32 %v4313_v42, %v2269_v57  ;;  %2962 = vmatpush.bf16.msra.mxu2 %v4150_v34 }
 0x314   : > { %v2277_v11 = vadd.f32 %v4313_v42, %v2270_v58  ;;  %2831 = vmatpush.bf16.msra.mxu1 %v4138_v35 }
 0x315   : > { %vm2279_vm14 = vcmp.ge.f32.partialorder %v2274_v6, 0.0  ;;  %vm2280_vm15 = vcmp.ge.f32.partialorder %v2275_v9, 0.0  ;;  %v2284_v62 = vmul.f32 0.01, %v2274_v6  ;;  %v2285_v30 = vmul.f32 0.01, %v2275_v9 }
 0x316   : > { %vm2281_vm0 = vcmp.ge.f32.partialorder %v2276_v3, 0.0  ;;  %vm2282_vm1 = vcmp.ge.f32.partialorder %v2277_v11, 0.0  ;;  %v2286_v0 = vmul.f32 0.01, %v2276_v3  ;;  %v2287_v1 = vmul.f32 0.01, %v2277_v11 }
 0x317   : > { %v2289_v12 = vsel %vm2279_vm14, %v2274_v6, %v2284_v62  ;;  %v2290_v38 = vsel %vm2280_vm15, %v2275_v9, %v2285_v30  ;;  %vm2283_vm2 = vcmp.ge.f32.partialorder %v2278_v4, 0.0  ;;  %v2288_v53 = vmul.f32 0.01, %v2278_v4  ;;  %2963 = vmatpush.bf16.msra.mxu2 %v4149_v47 }
 0x318   : > { %v4216_v36 = vpack.c.bf16 %v2290_v38, %v2289_v12  ;;  %v2291_v16 = vsel %vm2281_vm0, %v2276_v3, %v2286_v0  ;;  %v2292_v5 = vsel %vm2282_vm1, %v2277_v11, %v2287_v1 }
 0x319   : > { %v4221_v17 = vpack.c.bf16 %v2292_v5, %v2291_v16  ;;  %v2293_v19 = vsel %vm2283_vm2, %v2278_v4, %v2288_v53 }
 0x31a   : > { %4217 = vst [vmem:[#allocation3 + $0x10] sm:$0xff] %v4216_v36   ;;  %v2298_v44 = vpack.c.bf16 %v2293_v19, %v2293_v19 }
 0x31b   : > { %4232 = vst [vmem:[#allocation3] sm:$0xff] %v4221_v17   ;;  %v4137_v17 = vld [vmem:[#allocation3 + $0x8] sm:$0x30] }
 0x31c   : > { %v2307_v40 = vsel %vm2305_vm7, %v2298_v44, %v2306_v32 }
 0x31d   : > { %2308 = vst [vmem:[#allocation3 + $0x8] sm:$0x7] %v2307_v40 }
 0x321   : > { %v4103_v10 = vld [vmem:[#allocation3 + $0x10] sm:$0xff] }
 0x322   : > { %v3819_v21 = vld [vmem:[#allocation3 + $0x10] sm:$0xe]  ;;  %v4124_v55 = vld [vmem:[#allocation3 + $0x10] sm:$0xf0]  ;;  %v4125_v41 = vld [vmem:[#allocation3] sm:$0xff]  ;;  %2402 = vmatmul.bf16.vlgmr.msrb.gmra.mxu1 %v4103_v10 }
 0x323   : > { %v3820_v56 = vor.u32 %v4124_v55, %v3819_v21  ;;  %v4113_v24 = vld [vmem:[#allocation3 + $0x10] sm:$0xff]  ;;  %v4114_v45 = vld [vmem:[#allocation3] sm:$0xff]  ;;  %v2616_v18 = vrot.slane %v4125_v41, 1 }
 0x324   : > { %v2468_v46 = vshll.u32 %v4113_v24, 16  ;;  %v2473_v59 = vshll.u32 %v4114_v45, 16  ;;  %v2466_v27 = vshrl.u32 %v4113_v24, 16  ;;  %v3827_v61 = vld [vmem:[#allocation3 + $0x8] sm:$0xf]  ;;  %v4104_v33 = vld [vmem:[#allocation3] sm:$0xff] }
 0x325   : > { %v2615_v39 = vrot.slane %v3820_v56, 1  ;;  %v3767_v26 = vld [vmem:[#allocation3 + $0x8] sm:$0xf]  ;;  %v3828_v37 = vor.u32 %v4126_v29, %v3827_v61  ;;  %v2477_v49 = vshrl.u32 %v4114_v45, 16  ;;  %v3879_v4 = vld [vmem:[#allocation3 + $0x10] sm:$0xe] }
 0x326   : > { %v2470_v48 = vrot.slane %v2468_v46, 1  ;;  %v2475_v63 = vrot.slane %v2473_v59, 1  ;;  %v3768_v22 = vor.u32 %v4115_v8, %v3767_v26  ;;  %v2313_v57 = vld [vmem:[#allocation3 + $0x8] sm:$0xf]  ;;  %v4135_v6 = vld [vmem:[#allocation3 + $0x10] sm:$0xf0] }
 0x327   : > { %v2617_v25 = vsel %vm1479_vm4, %v2615_v39, %v2616_v18  ;;  %v2618_v42 = vrot.slane %v3828_v37, 1  ;;  %v2339_v58 = vunpack.c.l.b16 %v2313_v57  ;;  %v4136_v3 = vld [vmem:[#allocation3] sm:$0xff]  ;;  %v3880_v11 = vor.u32 %v4135_v6, %v3879_v4  ;;  %v3939_v19 = vld [vmem:[#allocation3 + $0x10] sm:$0xc]  ;;  %v4146_v32 = vld [vmem:[#allocation3 + $0x10] sm:$0xf0] }
 0x328   : > { %2679 = vmatmul.bf16.vlgmr.msra.gmra.mxu3 %v2617_v25  ;;  %v2471_v28 = vor.u32 %v2470_v48, %v2466_v27  ;;  %v2481_v43 = vshll.u32 %v3768_v22, 16  ;;  %v2479_v54 = vor.u32 %v2477_v49, %v2475_v63  ;;  %v2756_v0 = vshrl.u32 %v4136_v3, 16  ;;  %v3887_v44 = vld [vmem:[#allocation3 + $0x8] sm:$0xf]  ;;  %v4147_v20 = vld [vmem:[#allocation3] sm:$0xff] }
 0x329   : > { %v2619_v50 = vsel %vm1479_vm4, %v2616_v18, %v2618_v42  ;;  %v2342_v9 = vpack.c.b16 %v2339_v58, %v2339_v58  ;;  %v2748_v62 = vshrl.u32 %v3880_v11, 16  ;;  %v2751_v30 = vshll.u32 %v3880_v11, 16  ;;  %v3947_v39 = vld [vmem:[#allocation3 + $0x8] sm:$0xf]  ;;  %v4148_v18 = vld [vmem:[#allocation3 + $0x8] sm:$0x30] }
 0x32a   : > { %v2476_v23 = vsel %vm1193_vm3, %v2471_v28, %v2475_v63  ;;  %v2483_v60 = vrot.slane %v2481_v43, 1  ;;  %v2759_v1 = vshll.u32 %v4136_v3, 16  ;;  %v2485_v12 = vshrl.u32 %v3768_v22, 16 }
 0x32b   : > { %2547 = vmatmul.bf16.vlgmr.msrb.gmra.mxu2 %v2476_v23  ;;  %v2750_v53 = vrot.slane %v2748_v62, 1  ;;  %v2753_v13 = vrot.slane %v2751_v30, 2  ;;  %v2758_v15 = vrot.slane %v2756_v0, 1  ;;  %v3940_v40 = vor.u32 %v4146_v32, %v3939_v19 }
 0x32c   : > { %v2484_v7 = vsel %vm1193_vm3, %v2479_v54, %v2483_v60  ;;  %v2487_v38 = vor.u32 %v2485_v12, %v2483_v60  ;;  %v2761_v36 = vrot.slane %v2759_v1, 2  ;;  %v3888_v31 = vor.u32 %v4137_v17, %v3887_v44 }
 0x32d   : > { %v2754_v16 = vor.u32 %v2753_v13, %v2750_v53  ;;  %v2900_v10 = vrot.slane %v3940_v40, 2  ;;  %v2901_v21 = vrot.slane %v4147_v20, 2  ;;  %v3948_v59 = vor.u32 %v4148_v18, %v3947_v39 }
 0x32e   : > { %v2762_v5 = vor.u32 %v2761_v36, %v2758_v15  ;;  %v2765_v55 = vshrl.u32 %v3888_v31, 16  ;;  %v2768_v41 = vshll.u32 %v3888_v31, 16  ;;  %v4375_v31 = vmov 11.0  }
 0x32f   : > { %v2902_v56 = vsel %vm2011_vm6, %v2900_v10, %v2901_v21  ;;  %v2903_v25 = vrot.slane %v3948_v59, 2  ;;  %4321 = vrcp.f32 %v4375_v31 }
 0x330   : > { %v2763_v2 = vsel %vm1717_vm5, %v2754_v16, %v2762_v5  ;;  %v2767_v24 = vrot.slane %v2765_v55, 1  ;;  %v2770_v45 = vrot.slane %v2768_v41, 2 }
 0x331   : > { %v2904_v27 = vsel %vm2011_vm6, %v2901_v21, %v2903_v25 }
 0x332   : > { %2407 = vmatmul.bf16.gmra.mxu1 %v4104_v33  ;;  %v2771_v52 = vor.u32 %v2770_v45, %v2767_v24 }
 0x334   : > { %v2772_v46 = vsel %vm1717_vm5, %v2762_v5, %v2771_v52 }
 0x335   : > { %v4322_v24 = vpop.eup %4321 }
 0x336   : > { %vm3017_vm3 = vweird.f32 %v4322_v24 }
 0x338   : > { %2684 = vmatmul.bf16.gmra.mxu3 %v2619_v50 }
 0x33b   : > { %2552 = vmatmul.bf16.gmra.mxu2 %v2484_v7 }
 0x342   : > { %2412 = vmatmul.bf16.gmra.mxu1 %v2342_v9 }
 0x348   : > { %2689 = vmatmul.bf16.gmra.mxu3 %v2618_v42 }
 0x34b   : > { %2557 = vmatmul.bf16.gmra.mxu2 %v2487_v38 }
 0x352   : > { %2832 = vmatmul.bf16.vlgmr.msra.gmra.mxu1 %v2763_v2 }
 0x35b   : > { %2964 = vmatmul.bf16.vlgmr.msra.gmra.mxu2 %v2902_v56 }
 0x362   : > { %2837 = vmatmul.bf16.gmra.mxu1 %v2772_v46  ;;  %v4314_v46 = vld [vmem:[%s5063_s4 + $0x5] ss:$0 sm:$0xff] }
 0x36b   : > { %2969 = vmatmul.bf16.gmra.mxu2 %v2904_v27  ;;  %v3013_v27 = vmul.f32 11.0, %v4322_v24 }
 0x372   : > { %2842 = vmatmul.bf16.gmra.mxu1 %v2771_v52 }
 0x37b   : > { %2974 = vmatmul.bf16.gmra.mxu2 %v2903_v25 }
 0x39f   : > { %v2403_v48 = vpop.f32.mrf.mxu1 }
 0x3a7   : > { %v2405_v51 = vpop.f32.mrf.mxu1 }
 0x3ab   : > { %v2680_v28 = vpop.f32.mrf.mxu3 }
 0x3ae   : > { %v2548_v63 = vpop.f32.mrf.mxu2 }
 0x3af   : > { %v2408_v23 = vpop.f32.mrf.mxu1  ;;  %v2562_v50 = vadd.f32 %v2548_v63, %v2403_v48  ;;  %v3014_v63 = vsub.f32 1.0, %v3013_v27 }
 0x3b1   : > { %v2694_v60 = vadd.f32 %v2680_v28, %v2562_v50 }
 0x3b3   : > { %v2682_v61 = vpop.f32.mrf.mxu3 }
 0x3b6   : > { %v2550_v29 = vpop.f32.mrf.mxu2 }
 0x3b7   : > { %v2410_v8 = vpop.f32.mrf.mxu1  ;;  %v2563_v58 = vadd.f32 %v2550_v29, %v2405_v51  ;;  %v3015_v29 = vmul.f32 %v4322_v24, %v3014_v63 }
 0x3b9   : > { %v2695_v9 = vadd.f32 %v2682_v61, %v2563_v58 }
 0x3bb   : > { %v2685_v26 = vpop.f32.mrf.mxu3 }
 0x3be   : > { %v2553_v14 = vpop.f32.mrf.mxu2 }
 0x3bf   : > { %v2413_v34 = vpop.f32.mrf.mxu1  ;;  %v2564_v62 = vadd.f32 %v2553_v14, %v2408_v23  ;;  %v3016_v14 = vadd.f32 %v4322_v24, %v3015_v29 }
 0x3c1   : > { %v2696_v1 = vadd.f32 %v2685_v26, %v2564_v62 }
 0x3c3   : > { %v2687_v35 = vpop.f32.mrf.mxu3 }
 0x3c6   : > { %v2555_v37 = vpop.f32.mrf.mxu2 }
 0x3c7   : > { %v2415_v22 = vpop.f32.mrf.mxu1  ;;  %v2565_v53 = vadd.f32 %v2555_v37, %v2410_v8  ;;  %v3018_v37 = vsel %vm3017_vm3, %v4322_v24, %v3016_v14 }
 0x3c9   : > { %v2697_v36 = vadd.f32 %v2687_v35, %v2565_v53 }
 0x3cb   : > { %v2690_v33 = vpop.f32.mrf.mxu3 }
 0x3ce   : > { %v2558_v42 = vpop.f32.mrf.mxu2 }
 0x3cf   : > { %v2833_v43 = vpop.f32.mrf.mxu1  ;;  %v2566_v17 = vadd.f32 %v2558_v42, %v2413_v34 }
 0x3d0   : > { %v2847_v7 = vadd.f32 %v2833_v43, %v2694_v60 }
 0x3d1   : > { %v2698_v44 = vadd.f32 %v2690_v33, %v2566_v17 }
 0x3d3   : > { %v2692_v47 = vpop.f32.mrf.mxu3 }
 0x3d6   : > { %v2560_v49 = vpop.f32.mrf.mxu2 }
 0x3d7   : > { %v2835_v54 = vpop.f32.mrf.mxu1 }
 0x3d8   : > { %v2848_v3 = vadd.f32 %v2835_v54, %v2695_v9 }
 0x3de   : > { %v2965_v57 = vpop.f32.mrf.mxu2 }
 0x3df   : > { %v2979_v4 = vadd.f32 %v2965_v57, %v2847_v7  ;;  %v2838_v6 = vpop.f32.mrf.mxu1 }
 0x3e0   : > { %v2849_v12 = vadd.f32 %v2838_v6, %v2696_v1 }
 0x3e1   : > { %2984 = vst [vmem:[#allocation4] sm:$0xff] %v2979_v4 }
 0x3e6   : > { %v2967_v11 = vpop.f32.mrf.mxu2 }
 0x3e7   : > { %v2980_v30 = vadd.f32 %v2967_v11, %v2848_v3  ;;  %v2840_v0 = vpop.f32.mrf.mxu1 }
 0x3e8   : > { %v2850_v16 = vadd.f32 %v2840_v0, %v2697_v36  ;;  %v4316_v36 = vld [vmem:[%s5063_s4 + $0x7] ss:$0 sm:$0xff] }
 0x3e9   : > { %2985 = vst [vmem:[#allocation4 + $0x8] sm:$0xff] %v2980_v30 }
 0x3ee   : > { %v2970_v38 = vpop.f32.mrf.mxu2 }
 0x3ef   : > { %v2981_v13 = vadd.f32 %v2970_v38, %v2849_v12  ;;  %v2843_v15 = vpop.f32.mrf.mxu1  ;;  %v4315_v38 = vld [vmem:[%s5063_s4 + $0x6] ss:$0 sm:$0xff] }
 0x3f0   : > { %v2851_v2 = vadd.f32 %v2843_v15, %v2698_v44 }
 0x3f1   : > { %2986 = vst [vmem:[#allocation4 + $0x10] sm:$0xff] %v2981_v13 }
 0x3f6   : > { %v2972_v5 = vpop.f32.mrf.mxu2 }
 0x3f7   : > { %v2982_v19 = vadd.f32 %v2972_v5, %v2850_v16  ;;  %v2845_v32 = vpop.f32.mrf.mxu1 }
 0x3f8   : > { %v2989_v10 = vld [vmem:[#allocation4] ss:$3 sm:$0xff]  ;;  %v2991_v21 = vld [vmem:[#allocation4 + $0x1] ss:$3 sm:$0xff]  ;;  %v2995_v52 = vld [vmem:[#allocation4 + $0x2] ss:$3 sm:$0xff] }
 0x3f9   : > { %2987 = vst [vmem:[#allocation4 + $0x18] sm:$0xff] %v2982_v19  ;;  %v2993_v55 = vmax.f32 %v2989_v10, %v2991_v21 }
 0x3fb   : > { %v2997_v18 = vmax.f32 %v2993_v55, %v2995_v52 }
 0x3fd   : > { %v3001_v51 = vadd.f32 %v4314_v46, %v2997_v18 }
 0x3fe   : > { %v2975_v20 = vpop.f32.mrf.mxu2 }
 0x3ff   : > { %v2983_v40 = vadd.f32 %v2975_v20, %v2851_v2 }
 0x400   : > { %v2990_v41 = vld [vmem:[#allocation4 + $0x18] ss:$3 sm:$0x7]  ;;  %v2992_v56 = vld [vmem:[#allocation4 + $0x19] ss:$3 sm:$0x7] }
 0x401   : > { %2988 = vst [vmem:[#allocation4 + $0x20] sm:$0xff] %v2983_v40  ;;  %v2994_v39 = vmax.f32 %v2990_v41, %v2992_v56 }
 0x406   : > { %v2977_v45 = vpop.f32.mrf.mxu2 }
 0x408   : > { %v2996_v59 = vld [vmem:[#allocation4 + $0x1a] ss:$3 sm:$0x7] }
 0x409   : > { %v2998_v25 = vmax.f32 %v2994_v39, %v2996_v59 }
 0x40b   : > { %v3002_v48 = vadd.f32 %v4314_v46, %v2998_v25 }
 0x40d   : > { %v3004_v28 = vsel %vm2303_vm12, %v3002_v48, 0.0 }
 0x40e   : > { %v3005_v23 = vadd.f32 %v3004_v28, %v3001_v51 }
 0x410   : > { %v3006_v61 = vrot.slane %v3005_v23, 4 }
 0x412   : > { %v3007_v8 = vadd.f32 %v3006_v61, %v3005_v23 }
 0x414   : > { %v3008_v26 = vrot.slane %v3007_v8, 2 }
 0x416   : > { %v3009_v34 = vadd.f32 %v3008_v26, %v3007_v8 }
 0x418   : > { %v3010_v35 = vrot.slane %v3009_v34, 1 }
 0x41a   : > { %v3011_v22 = vadd.f32 %v3010_v35, %v3009_v34 }
 0x41c   : > { %v3019_v33 = vmul.f32 %v3018_v37, %v3011_v22 }
 0x41e   : > { %v3020_v42 = vsub.f32 %v3001_v51, %v3019_v33  ;;  %v3021_v43 = vsub.f32 %v3002_v48, %v3019_v33 }
 0x420   : > { %v3022_v47 = vmul.f32 %v3020_v42, %v3020_v42  ;;  %v3023_v49 = vmul.f32 %v3021_v43, %v3021_v43 }
 0x422   : > { %v3024_v50 = vsel %vm2303_vm12, %v3023_v49, 0.0 }
 0x423   : > { %v3025_v54 = vadd.f32 %v3024_v50, %v3022_v47 }
 0x425   : > { %v3026_v60 = vrot.slane %v3025_v54, 4 }
 0x427   : > { %v3027_v7 = vadd.f32 %v3026_v60, %v3025_v54 }
 0x429   : > { %v3028_v57 = vrot.slane %v3027_v7, 2 }
 0x42b   : > { %v3029_v58 = vadd.f32 %v3028_v57, %v3027_v7 }
 0x42d   : > { %v3030_v4 = vrot.slane %v3029_v58, 1 }
 0x42f   : > { %v3031_v6 = vadd.f32 %v3030_v4, %v3029_v58 }
 0x431   : > { %v3032_v9 = vmul.f32 %v3031_v6, %v3018_v37 }
 0x433   : > { %v3033_v3 = vadd.f32 1e-05, %v3032_v9 }
 0x435   : > { %4323 = vrsqrt.f32 %v3033_v3  ;;  %vm3040_vm5 = vweird.f32 %v3033_v3 }
 0x43b   : > { %v4324_v11 = vpop.eup %4323 }
 0x43c   : > { %v3035_v62 = vmul.f32 %v4324_v11, %v3033_v3  ;;  %vm3041_vm4 = vweird.f32 %v4324_v11 }
 0x43d   : > { %vm3042_vm6 = vmor %vm3040_vm5, %vm3041_vm4 }
 0x43e   : > { %v3036_v30 = vmul.f32 %v4324_v11, %v3035_v62 }
 0x440   : > { %v3037_v0 = vmul.f32 0.5, %v3036_v30 }
 0x442   : > { %v3038_v1 = vsub.f32 1.5, %v3037_v0 }
 0x444   : > { %v3039_v12 = vmul.f32 %v4324_v11, %v3038_v1 }
 0x446   : > { %v3043_v53 = vsel %vm3042_vm6, %v4324_v11, %v3039_v12 }
 0x447   : > { %v3044_v13 = vmul.f32 %v3043_v53, %v3020_v42  ;;  %v3045_v15 = vmul.f32 %v3043_v53, %v3021_v43 }
 0x449   : > { %v3048_v16 = vmul.f32 %v4315_v38, %v3044_v13  ;;  %v3049_v5 = vmul.f32 %v4315_v38, %v3045_v15 }
 0x44b   : > { %v3052_v17 = vadd.f32 %v4316_v36, %v3048_v16  ;;  %v3053_v19 = vadd.f32 %v4316_v36, %v3049_v5 }
 0x44d   : > { %vm3054_vm8 = vcmp.ge.f32.partialorder %v3052_v17, 0.0  ;;  %vm3055_vm9 = vcmp.ge.f32.partialorder %v3053_v19, 0.0  ;;  %v3056_v32 = vmul.f32 0.01, %v3052_v17  ;;  %v3057_v44 = vmul.f32 0.01, %v3053_v19 }
 0x44f   : > { %v3058_v2 = vsel %vm3054_vm8, %v3052_v17, %v3056_v32  ;;  %v3059_v20 = vsel %vm3055_vm9, %v3053_v19, %v3057_v44 }
 0x450   : > { %3060 = vst [vmem:[%s4442_s30] sm:$0xff] %v3058_v2 }
 0x451   : > { %3061 = vst [vmem:[%s4442_s30 + $0x8] sm:$0x7] %v3059_v20 }
 0x452 PF: > { %s15_s22 = sadd.s32 1, %s4367_s22   ;;  %s5065_s18 = smov %s4359_s20 }
 0x453   : > { %p12_p10 = scmp.ge.s32.totalorder %s15_s22, 6   ;;  %s5066_s19 = smov %s4363_s21 }
 0x454   : > { %s5067_s20 = smov %s5070_s23  ;;  %s5068_s21 = smov %s5074_s24 }
 0x455   :  { %14 = sbr.rel (!%p12_p10) target bundleno = 3 (0x3), region = 120 }

</bundles_post_ra>
